<compile_context>
chip_gen: v7x
topology: tpu7x:2x2x1
jax: 0.10.0
libtpu: 0.0.40
codegen_flags: <defaults>
</compile_context>

<pallas_src>
import math
import functools

import jax
import jax.numpy as jnp
from jax import lax
from jax.experimental import pallas as pl
from jax.experimental.pallas import tpu as pltpu

# ---------------- model config (small, consistent with the module) ----------
B = 2            # batch
S = 16           # sequence length
H = 128          # hidden size   (768 in real BERT-base)
NH = 2           # attention heads
DH = H // NH     # head dim
I = 512          # intermediate (FFN) size
L = 2            # encoder layers
VOCAB = 50
MAX_POS = 64
NUM_LABELS = 6
CLS_PAD = 128    # classifier output padded to a full lane width
LN_EPS = 1e-12


# -------- fully fused kernel: one grid step == (one sequence, one layer) ----
def _bert_kernel(emb_ref, mask_ref, eg_ref, eb_ref,
                 wqkv_ref, bqkv_ref, wo_ref, bo_ref, ln1g_ref, ln1b_ref,
                 w1_ref, b1_ref, w2_ref, b2_ref, ln2g_ref, ln2b_ref,
                 pw_ref, pb_ref, cw_ref, cb_ref,
                 x_ref, logits_ref,
                 ctx_ref,
                 *, seq, heads, head_dim, hidden):
    layer = pl.program_id(1)

    def layernorm(h, g, b):
        mu = jnp.mean(h, axis=-1, keepdims=True)
        d = h - mu
        var = jnp.mean(d * d, axis=-1, keepdims=True)
        return d * lax.rsqrt(var + LN_EPS) * g + b

    # ---- layer 0: initialize resident activation from embeddings + emb-LN --
    @pl.when(layer == 0)
    def _():
        x_ref[...] = layernorm(emb_ref[...], eg_ref[...], eb_ref[...])

    x = x_ref[...]                                          # (S, H) fp32, resident

    # ---- fused QKV projection: (S, H) x (H, 3H) on the MXU (bf16, fp32 acc)
    qkv = jnp.dot(x.astype(jnp.bfloat16), wqkv_ref[...],
                  preferred_element_type=jnp.float32) + bqkv_ref[...]
    q = qkv[:, 0 * hidden:1 * hidden]
    k = qkv[:, 1 * hidden:2 * hidden]
    v = qkv[:, 2 * hidden:3 * hidden]

    # ---- attention, static unroll over heads; ctx assembled in bf16 scratch -
    scale = 1.0 / math.sqrt(head_dim)
    bias = mask_ref[...][:, :seq]                           # (1, S) additive
    for h in range(heads):
        cs = slice(h * head_dim, (h + 1) * head_dim)
        qh = q[:, cs].astype(jnp.bfloat16)                  # (S, DH)
        kh = k[:, cs].astype(jnp.bfloat16)
        vh = v[:, cs].astype(jnp.bfloat16)
        # contract last axes of q and k directly (no explicit transpose)
        s = lax.dot_general(qh, kh, (((1,), (1,)), ((), ())),
                            preferred_element_type=jnp.float32) * scale
        s = s + bias                                        # (S, S)
        s = s - jnp.max(s, axis=-1, keepdims=True)
        p = jnp.exp(s)
        p = p * pl.reciprocal(jnp.sum(p, axis=-1, keepdims=True), approx=True)
        ctx_ref[:, cs] = jnp.dot(p.astype(jnp.bfloat16), vh,
                                 preferred_element_type=jnp.float32
                                 ).astype(jnp.bfloat16)

    # ---- output projection + residual + LayerNorm1 ----
    attn_out = jnp.dot(ctx_ref[...], wo_ref[...],
                       preferred_element_type=jnp.float32) + bo_ref[...]
    x = layernorm(attn_out + x, ln1g_ref[...], ln1b_ref[...])

    # ---- FFN: GELU(x W1 + b1) W2 + b2, residual + LayerNorm2 ----
    hmid = jnp.dot(x.astype(jnp.bfloat16), w1_ref[...],
                   preferred_element_type=jnp.float32) + b1_ref[...]
    # TODO(synk): tanh-approx GELU (HF BERT default is exact erf GELU; ~1e-3 diff)
    c = math.sqrt(2.0 / math.pi)
    hmid = 0.5 * hmid * (1.0 + jnp.tanh(c * (hmid + 0.044715 * hmid * hmid * hmid)))
    ffn = jnp.dot(hmid.astype(jnp.bfloat16), w2_ref[...],
                  preferred_element_type=jnp.float32) + b2_ref[...]
    x_new = layernorm(ffn + x, ln2g_ref[...], ln2b_ref[...])
    x_ref[...] = x_new

    # ---- last layer: fused pooler (tanh) + classifier on the [CLS] row ------
    @pl.when(layer == pl.num_programs(1) - 1)
    def _():
        cls_tok = x_new[0:1, :]                             # (1, H) = [CLS]
        pooled = jnp.tanh(
            jnp.dot(cls_tok.astype(jnp.bfloat16), pw_ref[...],
                    preferred_element_type=jnp.float32) + pb_ref[...])
        logits_ref[...] = (jnp.dot(pooled.astype(jnp.bfloat16), cw_ref[...],
                                   preferred_element_type=jnp.float32)
                           + cb_ref[...])


def pallas_bert_pos(emb, mask_bias, params, *, batch, seq):
    """emb: (B, S, H) fp32; mask_bias: (B, 1, Sp) fp32 additive (lane-padded).

    Returns (x: (B, S, H), logits_padded: (B, 1, CLS_PAD)).
    """
    def _layer(arr):   # stacked per-layer parameter: select layer l, squeeze it
        return pl.BlockSpec((None,) + arr.shape[1:],
                            lambda bt, l: (l,) + (0,) * (arr.ndim - 1))

    def _const(arr):   # shared (constant-index) parameter
        # TODO(synk): single-buffer constant-index inputs (pipeline_mode) once
        # pl.Buffered(1) is load-bearing at real sizes; trivial VMEM here.
        return pl.BlockSpec(arr.shape, lambda bt, l: (0,) * arr.ndim)

    kernel = functools.partial(_bert_kernel, seq=seq, heads=NH,
                               head_dim=DH, hidden=H)

    return pl.pallas_call(
        kernel,
        out_shape=(jax.ShapeDtypeStruct((batch, seq, H), jnp.float32),
                   jax.ShapeDtypeStruct((batch, 1, CLS_PAD), jnp.float32)),
        grid=(batch, L),
        in_specs=[
            pl.BlockSpec((None, seq, H), lambda bt, l: (bt, 0, 0)),           # emb
            pl.BlockSpec((None, 1, mask_bias.shape[-1]),
                         lambda bt, l: (bt, 0, 0)),                           # mask bias
            _const(params["emb_ln_g"]), _const(params["emb_ln_b"]),
            _layer(params["wqkv"]), _layer(params["bqkv"]),
            _layer(params["wo"]),   _layer(params["bo"]),
            _layer(params["ln1_g"]), _layer(params["ln1_b"]),
            _layer(params["w1"]),   _layer(params["b1"]),
            _layer(params["w2"]),   _layer(params["b2"]),
            _layer(params["ln2_g"]), _layer(params["ln2_b"]),
            _const(params["pool_w"]), _const(params["pool_b"]),
            _const(params["cls_w"]),  _const(params["cls_b"]),
        ],
        # same block index across the layer axis -> x / logits stay resident
        out_specs=(pl.BlockSpec((None, seq, H), lambda bt, l: (bt, 0, 0)),
                   pl.BlockSpec((None, 1, CLS_PAD), lambda bt, l: (bt, 0, 0))),
        scratch_shapes=[pltpu.VMEM((seq, H), jnp.bfloat16)],   # per-head ctx slab
        compiler_params=pltpu.CompilerParams(
            dimension_semantics=("parallel", "arbitrary")),
        # TODO(synk): at real BERT-base sizes (H=768, I=3072) set
        # vmem_limit_bytes explicitly, tile the FFN along I with an fp32
        # accumulator (v7x 64 MiB VMEM), target >=256-row token tiles on
        # v6e/v7x (128 on v5e), and optionally keep weights fp8 on v7x.
    )(emb, mask_bias,
      params["emb_ln_g"], params["emb_ln_b"],
      params["wqkv"], params["bqkv"], params["wo"], params["bo"],
      params["ln1_g"], params["ln1_b"],
      params["w1"], params["b1"], params["w2"], params["b2"],
      params["ln2_g"], params["ln2_b"],
      params["pool_w"], params["pool_b"], params["cls_w"], params["cls_b"])


# ---------------- parameter init (deterministic, synthetic) -----------------
def init_params(key):
    # TODO(synk): pretrained 'bert-base-uncased' weights are not loadable here;
    # parameters are synthetic deterministic initializations of the same structure.
    std = 0.02

    def nrm(k, shape):
        return jax.random.normal(k, shape, jnp.float32) * std

    keys = iter(jax.random.split(key, 64))

    wqkv, wo, w1, w2 = [], [], [], []
    for _ in range(L):
        wq = nrm(next(keys), (H, H))
        wk = nrm(next(keys), (H, H))
        wv = nrm(next(keys), (H, H))
        wqkv.append(jnp.concatenate([wq, wk, wv], axis=1))       # (H, 3H)
        wo.append(nrm(next(keys), (H, H)))
        w1.append(nrm(next(keys), (H, I)))
        w2.append(nrm(next(keys), (I, H)))

    cls_w = nrm(next(keys), (H, NUM_LABELS))
    cls_w_pad = jnp.zeros((H, CLS_PAD), jnp.float32).at[:, :NUM_LABELS].set(cls_w)

    return {
        # embeddings (gather done in XLA glue, kept fp32)
        "word_emb": nrm(next(keys), (VOCAB, H)),
        "pos_emb":  nrm(next(keys), (MAX_POS, H)),
        "type_emb": nrm(next(keys), (2, H)),
        "emb_ln_g": jnp.ones((1, H), jnp.float32),
        "emb_ln_b": jnp.zeros((1, H), jnp.float32),
        # stacked per-layer parameters (leading axis = layer)
        "wqkv": jnp.stack(wqkv).astype(jnp.bfloat16),            # (L, H, 3H)
        "bqkv": jnp.zeros((L, 1, 3 * H), jnp.float32),
        "wo":   jnp.stack(wo).astype(jnp.bfloat16),              # (L, H, H)
        "bo":   jnp.zeros((L, 1, H), jnp.float32),
        "ln1_g": jnp.ones((L, 1, H), jnp.float32),
        "ln1_b": jnp.zeros((L, 1, H), jnp.float32),
        "w1":   jnp.stack(w1).astype(jnp.bfloat16),              # (L, H, I)
        "b1":   jnp.zeros((L, 1, I), jnp.float32),
        "w2":   jnp.stack(w2).astype(jnp.bfloat16),              # (L, I, H)
        "b2":   jnp.zeros((L, 1, H), jnp.float32),
        "ln2_g": jnp.ones((L, 1, H), jnp.float32),
        "ln2_b": jnp.zeros((L, 1, H), jnp.float32),
        # pooler + classifier (classifier lane-padded to 128 outputs)
        "pool_w": nrm(next(keys), (H, H)).astype(jnp.bfloat16),
        "pool_b": jnp.zeros((1, H), jnp.float32),
        "cls_w":  cls_w_pad.astype(jnp.bfloat16),                # (H, 128)
        "cls_b":  jnp.zeros((1, CLS_PAD), jnp.float32),
    }


# ---------------- forward pass (BertPOS.forward) -----------------------------
def bert_pos_forward(params, input_ids, attention_mask):
    Bq, Sq = input_ids.shape

    # embeddings: word + position + token_type(0)  (gather is XLA glue)
    emb = (params["word_emb"][input_ids]
           + params["pos_emb"][:Sq][None, :, :]
           + params["type_emb"][0][None, None, :])               # (B, S, H)

    # additive attention-mask bias, lane-padded to a multiple of 128
    Sp = pl.cdiv(Sq, 128) * 128
    bias = (1.0 - attention_mask.astype(jnp.float32)) * (-1e9)   # (B, S)
    mask_bias = jnp.full((Bq, 1, Sp), -1e9, jnp.float32)
    mask_bias = mask_bias.at[:, 0, :Sq].set(bias)

    # fully fused: embeddings-LN + L layers + pooler + classifier, 1 pallas_call
    _, logits_pad = pallas_bert_pos(emb, mask_bias, params, batch=Bq, seq=Sq)
    return logits_pad.reshape(Bq, CLS_PAD)[:, :NUM_LABELS]       # (B, NUM_LABELS)


if __name__ == "__main__":
    key = jax.random.PRNGKey(0)
    k_param, k_ids = jax.random.split(key)
    params = init_params(k_param)

    input_ids = jax.random.randint(k_ids, (B, S), 0, VOCAB, dtype=jnp.int32)
    # second sequence has 4 padding positions masked out
    attention_mask = jnp.concatenate(
        [jnp.ones((1, S), jnp.int32),
         jnp.concatenate([jnp.ones((1, S - 4), jnp.int32),
                          jnp.zeros((1, 4), jnp.int32)], axis=1)], axis=0)

    logits = jax.jit(bert_pos_forward)(params, input_ids, attention_mask)
    logits = jax.block_until_ready(logits)
    assert logits.shape == (B, NUM_LABELS)
    assert bool(jnp.all(jnp.isfinite(logits)))
    print("KERNEL_OK")
</pallas_src>

<mosaic_0001>
module attributes {stable_mosaic.version = 11 : i64} {
  func.func @_bert_kernel(%arg0: i32, %arg1: i32, %arg2: memref<1x16x128xf32, #tpu.memory_space<vmem>>, %arg3: memref<1x1x128xf32, #tpu.memory_space<vmem>>, %arg4: memref<1x128xf32, #tpu.memory_space<vmem>>, %arg5: memref<1x128xf32, #tpu.memory_space<vmem>>, %arg6: memref<1x128x384xbf16, #tpu.memory_space<vmem>>, %arg7: memref<1x1x384xf32, #tpu.memory_space<vmem>>, %arg8: memref<1x128x128xbf16, #tpu.memory_space<vmem>>, %arg9: memref<1x1x128xf32, #tpu.memory_space<vmem>>, %arg10: memref<1x1x128xf32, #tpu.memory_space<vmem>>, %arg11: memref<1x1x128xf32, #tpu.memory_space<vmem>>, %arg12: memref<1x128x512xbf16, #tpu.memory_space<vmem>>, %arg13: memref<1x1x512xf32, #tpu.memory_space<vmem>>, %arg14: memref<1x512x128xbf16, #tpu.memory_space<vmem>>, %arg15: memref<1x1x128xf32, #tpu.memory_space<vmem>>, %arg16: memref<1x1x128xf32, #tpu.memory_space<vmem>>, %arg17: memref<1x1x128xf32, #tpu.memory_space<vmem>>, %arg18: memref<128x128xbf16, #tpu.memory_space<vmem>>, %arg19: memref<1x128xf32, #tpu.memory_space<vmem>>, %arg20: memref<128x128xbf16, #tpu.memory_space<vmem>>, %arg21: memref<1x128xf32, #tpu.memory_space<vmem>>, %arg22: memref<1x16x128xf32, #tpu.memory_space<vmem>>, %arg23: memref<1x1x128xf32, #tpu.memory_space<vmem>>, %arg24: memref<16x128xbf16, #tpu.memory_space<vmem>>) attributes {dimension_semantics = [#tpu.dimension_semantics<parallel>, #tpu.dimension_semantics<arbitrary>], iteration_bounds = array<i64: 2, 2>, scalar_prefetch = 0 : i64, scratch_operands = 1 : i64, tpu.core_type = #tpu.core_type<tc>, window_params = [{transform_indices = @transform_0, window_bounds = array<i64: 1, 16, 128>}, {transform_indices = @transform_1, window_bounds = array<i64: 1, 1, 128>}, {pipeline_mode = #tpu.pipeline_mode<synchronous>, transform_indices = @transform_2, window_bounds = array<i64: 1, 128>}, {pipeline_mode = #tpu.pipeline_mode<synchronous>, transform_indices = @transform_3, window_bounds = array<i64: 1, 128>}, {transform_indices = @transform_4, window_bounds = array<i64: 1, 128, 384>}, {transform_indices = @transform_5, window_bounds = array<i64: 1, 1, 384>}, {transform_indices = @transform_6, window_bounds = array<i64: 1, 128, 128>}, {transform_indices = @transform_7, window_bounds = array<i64: 1, 1, 128>}, {transform_indices = @transform_8, window_bounds = array<i64: 1, 1, 128>}, {transform_indices = @transform_9, window_bounds = array<i64: 1, 1, 128>}, {transform_indices = @transform_10, window_bounds = array<i64: 1, 128, 512>}, {transform_indices = @transform_11, window_bounds = array<i64: 1, 1, 512>}, {transform_indices = @transform_12, window_bounds = array<i64: 1, 512, 128>}, {transform_indices = @transform_13, window_bounds = array<i64: 1, 1, 128>}, {transform_indices = @transform_14, window_bounds = array<i64: 1, 1, 128>}, {transform_indices = @transform_15, window_bounds = array<i64: 1, 1, 128>}, {pipeline_mode = #tpu.pipeline_mode<synchronous>, transform_indices = @transform_16, window_bounds = array<i64: 128, 128>}, {pipeline_mode = #tpu.pipeline_mode<synchronous>, transform_indices = @transform_17, window_bounds = array<i64: 1, 128>}, {pipeline_mode = #tpu.pipeline_mode<synchronous>, transform_indices = @transform_18, window_bounds = array<i64: 128, 128>}, {pipeline_mode = #tpu.pipeline_mode<synchronous>, transform_indices = @transform_19, window_bounds = array<i64: 1, 128>}, {transform_indices = @transform_20, window_bounds = array<i64: 1, 16, 128>}, {transform_indices = @transform_21, window_bounds = array<i64: 1, 1, 128>}]} {
    %c0_i32 = arith.constant 0 : i32
    %0 = arith.cmpi eq, %arg1, %c0_i32 : i32
    %1 = arith.extui %0 : i1 to i32
    %c0_i32_0 = arith.constant 0 : i32
    %2 = arith.cmpi ne, %1, %c0_i32_0 : i32
    scf.if %2 {
      %c0_78 = arith.constant 0 : index
      %c0_79 = arith.constant 0 : index
      %c0_80 = arith.constant 0 : index
      %162 = vector.load %arg2[%c0_78, %c0_79, %c0_80] : memref<1x16x128xf32, #tpu.memory_space<vmem>>, vector<1x16x128xf32>
      %163 = vector.shape_cast %162 : vector<1x16x128xf32> to vector<16x128xf32>
      %c0_81 = arith.constant 0 : index
      %c0_82 = arith.constant 0 : index
      %164 = vector.load %arg4[%c0_81, %c0_82] : memref<1x128xf32, #tpu.memory_space<vmem>>, vector<1x128xf32>
      %c0_83 = arith.constant 0 : index
      %c0_84 = arith.constant 0 : index
      %165 = vector.load %arg5[%c0_83, %c0_84] : memref<1x128xf32, #tpu.memory_space<vmem>>, vector<1x128xf32>
      %cst_85 = arith.constant dense<0.000000e+00> : vector<16xf32>
      %166 = vector.multi_reduction <add>, %163, %cst_85 [1] : vector<16x128xf32> to vector<16xf32>
      %167 = vector.shape_cast %166 : vector<16xf32> to vector<16x1xf32>
      %cst_86 = arith.constant 1.280000e+02 : f32
      %168 = vector.broadcast %cst_86 : f32 to vector<16x1xf32>
      %169 = arith.divf %167, %168 : vector<16x1xf32>
      %170 = vector.broadcast %169 : vector<16x1xf32> to vector<16x128xf32>
      %171 = arith.subf %163, %170 : vector<16x128xf32>
      %172 = arith.mulf %171, %171 : vector<16x128xf32>
      %cst_87 = arith.constant dense<0.000000e+00> : vector<16xf32>
      %173 = vector.multi_reduction <add>, %172, %cst_87 [1] : vector<16x128xf32> to vector<16xf32>
      %174 = vector.shape_cast %173 : vector<16xf32> to vector<16x1xf32>
      %cst_88 = arith.constant 1.280000e+02 : f32
      %175 = vector.broadcast %cst_88 : f32 to vector<16x1xf32>
      %176 = arith.divf %174, %175 : vector<16x1xf32>
      %cst_89 = arith.constant 9.99999996E-13 : f32
      %177 = vector.broadcast %cst_89 : f32 to vector<16x1xf32>
      %178 = arith.addf %176, %177 : vector<16x1xf32>
      %179 = math.rsqrt %178 : vector<16x1xf32>
      %180 = vector.broadcast %179 : vector<16x1xf32> to vector<16x128xf32>
      %181 = arith.mulf %171, %180 : vector<16x128xf32>
      %182 = vector.broadcast %164 : vector<1x128xf32> to vector<16x128xf32>
      %183 = arith.mulf %181, %182 : vector<16x128xf32>
      %184 = vector.broadcast %165 : vector<1x128xf32> to vector<16x128xf32>
      %185 = arith.addf %183, %184 : vector<16x128xf32>
      %c0_90 = arith.constant 0 : index
      %c0_91 = arith.constant 0 : index
      %c0_92 = arith.constant 0 : index
      %186 = vector.load %arg22[%c0_90, %c0_91, %c0_92] : memref<1x16x128xf32, #tpu.memory_space<vmem>>, vector<1x16x128xf32>
      %187 = vector.shape_cast %186 : vector<1x16x128xf32> to vector<16x128xf32>
      %188 = vector.shape_cast %185 : vector<16x128xf32> to vector<1x16x128xf32>
      tpu.vector_store %arg22[%c0_90, %c0_91, %c0_92], %188 {strides = array<i32>} : memref<1x16x128xf32, #tpu.memory_space<vmem>>, vector<1x16x128xf32>,
    } else {
    }
    %c0 = arith.constant 0 : index
    %c0_1 = arith.constant 0 : index
    %c0_2 = arith.constant 0 : index
    %3 = vector.load %arg22[%c0, %c0_1, %c0_2] : memref<1x16x128xf32, #tpu.memory_space<vmem>>, vector<1x16x128xf32>
    %4 = vector.shape_cast %3 : vector<1x16x128xf32> to vector<16x128xf32>
    %5 = arith.truncf %4 : vector<16x128xf32> to vector<16x128xbf16>
    %c0_3 = arith.constant 0 : index
    %c0_4 = arith.constant 0 : index
    %c0_5 = arith.constant 0 : index
    %6 = vector.load %arg6[%c0_3, %c0_4, %c0_5] : memref<1x128x384xbf16, #tpu.memory_space<vmem>>, vector<1x128x384xbf16>
    %7 = vector.shape_cast %6 : vector<1x128x384xbf16> to vector<128x384xbf16>
    %cst = arith.constant dense<0.000000e+00> : vector<16x384xf32>
    %8 = tpu.matmul %5, %7, %cst {dimension_numbers = #tpu.dot_dimension_numbers<[1], [0], [0], [1], [0, 0, 1, 1], [], []>} : vector<16x128xbf16>, vector<128x384xbf16>, vector<16x384xf32> -> vector<16x384xf32>
    %c0_6 = arith.constant 0 : index
    %c0_7 = arith.constant 0 : index
    %c0_8 = arith.constant 0 : index
    %9 = vector.load %arg7[%c0_6, %c0_7, %c0_8] : memref<1x1x384xf32, #tpu.memory_space<vmem>>, vector<1x1x384xf32>
    %10 = vector.shape_cast %9 : vector<1x1x384xf32> to vector<1x384xf32>
    %11 = vector.broadcast %10 : vector<1x384xf32> to vector<16x384xf32>
    %12 = arith.addf %8, %11 : vector<16x384xf32>
    %13 = vector.extract_strided_slice %12 {offsets = [0, 0], sizes = [16, 128], strides = [1, 1]} : vector<16x384xf32> to vector<16x128xf32>
    %14 = vector.extract_strided_slice %12 {offsets = [0, 128], sizes = [16, 128], strides = [1, 1]} : vector<16x384xf32> to vector<16x128xf32>
    %15 = vector.extract_strided_slice %12 {offsets = [0, 256], sizes = [16, 128], strides = [1, 1]} : vector<16x384xf32> to vector<16x128xf32>
    %c0_9 = arith.constant 0 : index
    %c0_10 = arith.constant 0 : index
    %c0_11 = arith.constant 0 : index
    %16 = vector.load %arg3[%c0_9, %c0_10, %c0_11] : memref<1x1x128xf32, #tpu.memory_space<vmem>>, vector<1x1x128xf32>
    %17 = vector.shape_cast %16 : vector<1x1x128xf32> to vector<1x128xf32>
    %18 = vector.extract_strided_slice %17 {offsets = [0, 0], sizes = [1, 16], strides = [1, 1]} : vector<1x128xf32> to vector<1x16xf32>
    %19 = vector.extract_strided_slice %13 {offsets = [0, 0], sizes = [16, 64], strides = [1, 1]} : vector<16x128xf32> to vector<16x64xf32>
    %20 = arith.truncf %19 : vector<16x64xf32> to vector<16x64xbf16>
    %21 = vector.extract_strided_slice %14 {offsets = [0, 0], sizes = [16, 64], strides = [1, 1]} : vector<16x128xf32> to vector<16x64xf32>
    %22 = arith.truncf %21 : vector<16x64xf32> to vector<16x64xbf16>
    %23 = vector.extract_strided_slice %15 {offsets = [0, 0], sizes = [16, 64], strides = [1, 1]} : vector<16x128xf32> to vector<16x64xf32>
    %24 = arith.truncf %23 : vector<16x64xf32> to vector<16x64xbf16>
    %cst_12 = arith.constant dense<0.000000e+00> : vector<16x16xf32>
    %25 = tpu.matmul %20, %22, %cst_12 {dimension_numbers = #tpu.dot_dimension_numbers<[1], [1], [0], [0], [0, 0, 1, 0], [], []>} : vector<16x64xbf16>, vector<16x64xbf16>, vector<16x16xf32> -> vector<16x16xf32>
    %cst_13 = arith.constant 1.250000e-01 : f32
    %26 = vector.broadcast %cst_13 : f32 to vector<16x16xf32>
    %27 = arith.mulf %25, %26 : vector<16x16xf32>
    %28 = vector.broadcast %18 : vector<1x16xf32> to vector<16x16xf32>
    %29 = arith.addf %27, %28 : vector<16x16xf32>
    %cst_14 = arith.constant dense<0xFF800000> : vector<16xf32>
    %30 = vector.multi_reduction <maximumf>, %29, %cst_14 [1] : vector<16x16xf32> to vector<16xf32>
    %31 = vector.shape_cast %30 : vector<16xf32> to vector<16x1xf32>
    %32 = vector.broadcast %31 : vector<16x1xf32> to vector<16x16xf32>
    %33 = arith.subf %29, %32 : vector<16x16xf32>
    %34 = math.exp %33 : vector<16x16xf32>
    %cst_15 = arith.constant dense<0.000000e+00> : vector<16xf32>
    %35 = vector.multi_reduction <add>, %34, %cst_15 [1] : vector<16x16xf32> to vector<16xf32>
    %36 = vector.shape_cast %35 : vector<16xf32> to vector<16x1xf32>
    %37 = tpu.reciprocal %36 {approx = true} : vector<16x1xf32> -> vector<16x1xf32>
    %38 = vector.broadcast %37 : vector<16x1xf32> to vector<16x16xf32>
    %39 = arith.mulf %34, %38 : vector<16x16xf32>
    %40 = arith.truncf %39 : vector<16x16xf32> to vector<16x16xbf16>
    %cst_16 = arith.constant dense<0.000000e+00> : vector<16x64xf32>
    %41 = tpu.matmul %40, %24, %cst_16 {dimension_numbers = #tpu.dot_dimension_numbers<[1], [0], [0], [1], [0, 0, 1, 1], [], []>} : vector<16x16xbf16>, vector<16x64xbf16>, vector<16x64xf32> -> vector<16x64xf32>
    %42 = arith.truncf %41 : vector<16x64xf32> to vector<16x64xbf16>
    %c0_17 = arith.constant 0 : index
    %c0_18 = arith.constant 0 : index
    %43 = vector.load %arg24[%c0_17, %c0_18] : memref<16x128xbf16, #tpu.memory_space<vmem>>, vector<16x64xbf16>
    tpu.vector_store %arg24[%c0_17, %c0_18], %42 {strides = array<i32>} : memref<16x128xbf16, #tpu.memory_space<vmem>>, vector<16x64xbf16>,
    %44 = vector.extract_strided_slice %13 {offsets = [0, 64], sizes = [16, 64], strides = [1, 1]} : vector<16x128xf32> to vector<16x64xf32>
    %45 = arith.truncf %44 : vector<16x64xf32> to vector<16x64xbf16>
    %46 = vector.extract_strided_slice %14 {offsets = [0, 64], sizes = [16, 64], strides = [1, 1]} : vector<16x128xf32> to vector<16x64xf32>
    %47 = arith.truncf %46 : vector<16x64xf32> to vector<16x64xbf16>
    %48 = vector.extract_strided_slice %15 {offsets = [0, 64], sizes = [16, 64], strides = [1, 1]} : vector<16x128xf32> to vector<16x64xf32>
    %49 = arith.truncf %48 : vector<16x64xf32> to vector<16x64xbf16>
    %cst_19 = arith.constant dense<0.000000e+00> : vector<16x16xf32>
    %50 = tpu.matmul %45, %47, %cst_19 {dimension_numbers = #tpu.dot_dimension_numbers<[1], [1], [0], [0], [0, 0, 1, 0], [], []>} : vector<16x64xbf16>, vector<16x64xbf16>, vector<16x16xf32> -> vector<16x16xf32>
    %cst_20 = arith.constant 1.250000e-01 : f32
    %51 = vector.broadcast %cst_20 : f32 to vector<16x16xf32>
    %52 = arith.mulf %50, %51 : vector<16x16xf32>
    %53 = vector.broadcast %18 : vector<1x16xf32> to vector<16x16xf32>
    %54 = arith.addf %52, %53 : vector<16x16xf32>
    %cst_21 = arith.constant dense<0xFF800000> : vector<16xf32>
    %55 = vector.multi_reduction <maximumf>, %54, %cst_21 [1] : vector<16x16xf32> to vector<16xf32>
    %56 = vector.shape_cast %55 : vector<16xf32> to vector<16x1xf32>
    %57 = vector.broadcast %56 : vector<16x1xf32> to vector<16x16xf32>
    %58 = arith.subf %54, %57 : vector<16x16xf32>
    %59 = math.exp %58 : vector<16x16xf32>
    %cst_22 = arith.constant dense<0.000000e+00> : vector<16xf32>
    %60 = vector.multi_reduction <add>, %59, %cst_22 [1] : vector<16x16xf32> to vector<16xf32>
    %61 = vector.shape_cast %60 : vector<16xf32> to vector<16x1xf32>
    %62 = tpu.reciprocal %61 {approx = true} : vector<16x1xf32> -> vector<16x1xf32>
    %63 = vector.broadcast %62 : vector<16x1xf32> to vector<16x16xf32>
    %64 = arith.mulf %59, %63 : vector<16x16xf32>
    %65 = arith.truncf %64 : vector<16x16xf32> to vector<16x16xbf16>
    %cst_23 = arith.constant dense<0.000000e+00> : vector<16x64xf32>
    %66 = tpu.matmul %65, %49, %cst_23 {dimension_numbers = #tpu.dot_dimension_numbers<[1], [0], [0], [1], [0, 0, 1, 1], [], []>} : vector<16x16xbf16>, vector<16x64xbf16>, vector<16x64xf32> -> vector<16x64xf32>
    %67 = arith.truncf %66 : vector<16x64xf32> to vector<16x64xbf16>
    %c0_24 = arith.constant 0 : index
    %c64 = arith.constant 64 : index
    %68 = vector.load %arg24[%c0_24, %c64] : memref<16x128xbf16, #tpu.memory_space<vmem>>, vector<16x64xbf16>
    tpu.vector_store %arg24[%c0_24, %c64], %67 {strides = array<i32>} : memref<16x128xbf16, #tpu.memory_space<vmem>>, vector<16x64xbf16>,
    %c0_25 = arith.constant 0 : index
    %c0_26 = arith.constant 0 : index
    %69 = vector.load %arg24[%c0_25, %c0_26] : memref<16x128xbf16, #tpu.memory_space<vmem>>, vector<16x128xbf16>
    %c0_27 = arith.constant 0 : index
    %c0_28 = arith.constant 0 : index
    %c0_29 = arith.constant 0 : index
    %70 = vector.load %arg8[%c0_27, %c0_28, %c0_29] : memref<1x128x128xbf16, #tpu.memory_space<vmem>>, vector<1x128x128xbf16>
    %71 = vector.shape_cast %70 : vector<1x128x128xbf16> to vector<128x128xbf16>
    %cst_30 = arith.constant dense<0.000000e+00> : vector<16x128xf32>
    %72 = tpu.matmul %69, %71, %cst_30 {dimension_numbers = #tpu.dot_dimension_numbers<[1], [0], [0], [1], [0, 0, 1, 1], [], []>} : vector<16x128xbf16>, vector<128x128xbf16>, vector<16x128xf32> -> vector<16x128xf32>
    %c0_31 = arith.constant 0 : index
    %c0_32 = arith.constant 0 : index
    %c0_33 = arith.constant 0 : index
    %73 = vector.load %arg9[%c0_31, %c0_32, %c0_33] : memref<1x1x128xf32, #tpu.memory_space<vmem>>, vector<1x1x128xf32>
    %74 = vector.shape_cast %73 : vector<1x1x128xf32> to vector<1x128xf32>
    %75 = vector.broadcast %74 : vector<1x128xf32> to vector<16x128xf32>
    %76 = arith.addf %72, %75 : vector<16x128xf32>
    %77 = arith.addf %76, %4 : vector<16x128xf32>
    %c0_34 = arith.constant 0 : index
    %c0_35 = arith.constant 0 : index
    %c0_36 = arith.constant 0 : index
    %78 = vector.load %arg10[%c0_34, %c0_35, %c0_36] : memref<1x1x128xf32, #tpu.memory_space<vmem>>, vector<1x1x128xf32>
    %79 = vector.shape_cast %78 : vector<1x1x128xf32> to vector<1x128xf32>
    %c0_37 = arith.constant 0 : index
    %c0_38 = arith.constant 0 : index
    %c0_39 = arith.constant 0 : index
    %80 = vector.load %arg11[%c0_37, %c0_38, %c0_39] : memref<1x1x128xf32, #tpu.memory_space<vmem>>, vector<1x1x128xf32>
    %81 = vector.shape_cast %80 : vector<1x1x128xf32> to vector<1x128xf32>
    %cst_40 = arith.constant dense<0.000000e+00> : vector<16xf32>
    %82 = vector.multi_reduction <add>, %77, %cst_40 [1] : vector<16x128xf32> to vector<16xf32>
    %83 = vector.shape_cast %82 : vector<16xf32> to vector<16x1xf32>
    %cst_41 = arith.constant 1.280000e+02 : f32
    %84 = vector.broadcast %cst_41 : f32 to vector<16x1xf32>
    %85 = arith.divf %83, %84 : vector<16x1xf32>
    %86 = vector.broadcast %85 : vector<16x1xf32> to vector<16x128xf32>
    %87 = arith.subf %77, %86 : vector<16x128xf32>
    %88 = arith.mulf %87, %87 : vector<16x128xf32>
    %cst_42 = arith.constant dense<0.000000e+00> : vector<16xf32>
    %89 = vector.multi_reduction <add>, %88, %cst_42 [1] : vector<16x128xf32> to vector<16xf32>
    %90 = vector.shape_cast %89 : vector<16xf32> to vector<16x1xf32>
    %cst_43 = arith.constant 1.280000e+02 : f32
    %91 = vector.broadcast %cst_43 : f32 to vector<16x1xf32>
    %92 = arith.divf %90, %91 : vector<16x1xf32>
    %cst_44 = arith.constant 9.99999996E-13 : f32
    %93 = vector.broadcast %cst_44 : f32 to vector<16x1xf32>
    %94 = arith.addf %92, %93 : vector<16x1xf32>
    %95 = math.rsqrt %94 : vector<16x1xf32>
    %96 = vector.broadcast %95 : vector<16x1xf32> to vector<16x128xf32>
    %97 = arith.mulf %87, %96 : vector<16x128xf32>
    %98 = vector.broadcast %79 : vector<1x128xf32> to vector<16x128xf32>
    %99 = arith.mulf %97, %98 : vector<16x128xf32>
    %100 = vector.broadcast %81 : vector<1x128xf32> to vector<16x128xf32>
    %101 = arith.addf %99, %100 : vector<16x128xf32>
    %102 = arith.truncf %101 : vector<16x128xf32> to vector<16x128xbf16>
    %c0_45 = arith.constant 0 : index
    %c0_46 = arith.constant 0 : index
    %c0_47 = arith.constant 0 : index
    %103 = vector.load %arg12[%c0_45, %c0_46, %c0_47] : memref<1x128x512xbf16, #tpu.memory_space<vmem>>, vector<1x128x512xbf16>
    %104 = vector.shape_cast %103 : vector<1x128x512xbf16> to vector<128x512xbf16>
    %cst_48 = arith.constant dense<0.000000e+00> : vector<16x512xf32>
    %105 = tpu.matmul %102, %104, %cst_48 {dimension_numbers = #tpu.dot_dimension_numbers<[1], [0], [0], [1], [0, 0, 1, 1], [], []>} : vector<16x128xbf16>, vector<128x512xbf16>, vector<16x512xf32> -> vector<16x512xf32>
    %c0_49 = arith.constant 0 : index
    %c0_50 = arith.constant 0 : index
    %c0_51 = arith.constant 0 : index
    %106 = vector.load %arg13[%c0_49, %c0_50, %c0_51] : memref<1x1x512xf32, #tpu.memory_space<vmem>>, vector<1x1x512xf32>
    %107 = vector.shape_cast %106 : vector<1x1x512xf32> to vector<1x512xf32>
    %108 = vector.broadcast %107 : vector<1x512xf32> to vector<16x512xf32>
    %109 = arith.addf %105, %108 : vector<16x512xf32>
    %cst_52 = arith.constant 5.000000e-01 : f32
    %110 = vector.broadcast %cst_52 : f32 to vector<16x512xf32>
    %111 = arith.mulf %110, %109 : vector<16x512xf32>
    %cst_53 = arith.constant 4.471500e-02 : f32
    %112 = vector.broadcast %cst_53 : f32 to vector<16x512xf32>
    %113 = arith.mulf %112, %109 : vector<16x512xf32>
    %114 = arith.mulf %113, %109 : vector<16x512xf32>
    %115 = arith.mulf %114, %109 : vector<16x512xf32>
    %116 = arith.addf %109, %115 : vector<16x512xf32>
    %cst_54 = arith.constant 0.797884583 : f32
    %117 = vector.broadcast %cst_54 : f32 to vector<16x512xf32>
    %118 = arith.mulf %117, %116 : vector<16x512xf32>
    %119 = math.tanh %118 : vector<16x512xf32>
    %cst_55 = arith.constant 1.000000e+00 : f32
    %120 = vector.broadcast %cst_55 : f32 to vector<16x512xf32>
    %121 = arith.addf %120, %119 : vector<16x512xf32>
    %122 = arith.mulf %111, %121 : vector<16x512xf32>
    %123 = arith.truncf %122 : vector<16x512xf32> to vector<16x512xbf16>
    %c0_56 = arith.constant 0 : index
    %c0_57 = arith.constant 0 : index
    %c0_58 = arith.constant 0 : index
    %124 = vector.load %arg14[%c0_56, %c0_57, %c0_58] : memref<1x512x128xbf16, #tpu.memory_space<vmem>>, vector<1x512x128xbf16>
    %125 = vector.shape_cast %124 : vector<1x512x128xbf16> to vector<512x128xbf16>
    %cst_59 = arith.constant dense<0.000000e+00> : vector<16x128xf32>
    %126 = tpu.matmul %123, %125, %cst_59 {dimension_numbers = #tpu.dot_dimension_numbers<[1], [0], [0], [1], [0, 0, 1, 1], [], []>} : vector<16x512xbf16>, vector<512x128xbf16>, vector<16x128xf32> -> vector<16x128xf32>
    %c0_60 = arith.constant 0 : index
    %c0_61 = arith.constant 0 : index
    %c0_62 = arith.constant 0 : index
    %127 = vector.load %arg15[%c0_60, %c0_61, %c0_62] : memref<1x1x128xf32, #tpu.memory_space<vmem>>, vector<1x1x128xf32>
    %128 = vector.shape_cast %127 : vector<1x1x128xf32> to vector<1x128xf32>
    %129 = vector.broadcast %128 : vector<1x128xf32> to vector<16x128xf32>
    %130 = arith.addf %126, %129 : vector<16x128xf32>
    %131 = arith.addf %130, %101 : vector<16x128xf32>
    %c0_63 = arith.constant 0 : index
    %c0_64 = arith.constant 0 : index
    %c0_65 = arith.constant 0 : index
    %132 = vector.load %arg16[%c0_63, %c0_64, %c0_65] : memref<1x1x128xf32, #tpu.memory_space<vmem>>, vector<1x1x128xf32>
    %133 = vector.shape_cast %132 : vector<1x1x128xf32> to vector<1x128xf32>
    %c0_66 = arith.constant 0 : index
    %c0_67 = arith.constant 0 : index
    %c0_68 = arith.constant 0 : index
    %134 = vector.load %arg17[%c0_66, %c0_67, %c0_68] : memref<1x1x128xf32, #tpu.memory_space<vmem>>, vector<1x1x128xf32>
    %135 = vector.shape_cast %134 : vector<1x1x128xf32> to vector<1x128xf32>
    %cst_69 = arith.constant dense<0.000000e+00> : vector<16xf32>
    %136 = vector.multi_reduction <add>, %131, %cst_69 [1] : vector<16x128xf32> to vector<16xf32>
    %137 = vector.shape_cast %136 : vector<16xf32> to vector<16x1xf32>
    %cst_70 = arith.constant 1.280000e+02 : f32
    %138 = vector.broadcast %cst_70 : f32 to vector<16x1xf32>
    %139 = arith.divf %137, %138 : vector<16x1xf32>
    %140 = vector.broadcast %139 : vector<16x1xf32> to vector<16x128xf32>
    %141 = arith.subf %131, %140 : vector<16x128xf32>
    %142 = arith.mulf %141, %141 : vector<16x128xf32>
    %cst_71 = arith.constant dense<0.000000e+00> : vector<16xf32>
    %143 = vector.multi_reduction <add>, %142, %cst_71 [1] : vector<16x128xf32> to vector<16xf32>
    %144 = vector.shape_cast %143 : vector<16xf32> to vector<16x1xf32>
    %cst_72 = arith.constant 1.280000e+02 : f32
    %145 = vector.broadcast %cst_72 : f32 to vector<16x1xf32>
    %146 = arith.divf %144, %145 : vector<16x1xf32>
    %cst_73 = arith.constant 9.99999996E-13 : f32
    %147 = vector.broadcast %cst_73 : f32 to vector<16x1xf32>
    %148 = arith.addf %146, %147 : vector<16x1xf32>
    %149 = math.rsqrt %148 : vector<16x1xf32>
    %150 = vector.broadcast %149 : vector<16x1xf32> to vector<16x128xf32>
    %151 = arith.mulf %141, %150 : vector<16x128xf32>
    %152 = vector.broadcast %133 : vector<1x128xf32> to vector<16x128xf32>
    %153 = arith.mulf %151, %152 : vector<16x128xf32>
    %154 = vector.broadcast %135 : vector<1x128xf32> to vector<16x128xf32>
    %155 = arith.addf %153, %154 : vector<16x128xf32>
    %c0_74 = arith.constant 0 : index
    %c0_75 = arith.constant 0 : index
    %c0_76 = arith.constant 0 : index
    %156 = vector.load %arg22[%c0_74, %c0_75, %c0_76] : memref<1x16x128xf32, #tpu.memory_space<vmem>>, vector<1x16x128xf32>
    %157 = vector.shape_cast %156 : vector<1x16x128xf32> to vector<16x128xf32>
    %158 = vector.shape_cast %155 : vector<16x128xf32> to vector<1x16x128xf32>
    tpu.vector_store %arg22[%c0_74, %c0_75, %c0_76], %158 {strides = array<i32>} : memref<1x16x128xf32, #tpu.memory_space<vmem>>, vector<1x16x128xf32>,
    %c1_i32 = arith.constant 1 : i32
    %159 = arith.cmpi eq, %arg1, %c1_i32 : i32
    %160 = arith.extui %159 : i1 to i32
    %c0_i32_77 = arith.constant 0 : i32
    %161 = arith.cmpi ne, %160, %c0_i32_77 : i32
    scf.if %161 {
      %162 = vector.extract_strided_slice %155 {offsets = [0, 0], sizes = [1, 128], strides = [1, 1]} : vector<16x128xf32> to vector<1x128xf32>
      %163 = arith.truncf %162 : vector<1x128xf32> to vector<1x128xbf16>
      %c0_78 = arith.constant 0 : index
      %c0_79 = arith.constant 0 : index
      %164 = vector.load %arg18[%c0_78, %c0_79] : memref<128x128xbf16, #tpu.memory_space<vmem>>, vector<128x128xbf16>
      %cst_80 = arith.constant dense<0.000000e+00> : vector<1x128xf32>
      %165 = tpu.matmul %163, %164, %cst_80 {dimension_numbers = #tpu.dot_dimension_numbers<[1], [0], [0], [1], [0, 0, 1, 1], [], []>} : vector<1x128xbf16>, vector<128x128xbf16>, vector<1x128xf32> -> vector<1x128xf32>
      %c0_81 = arith.constant 0 : index
      %c0_82 = arith.constant 0 : index
      %166 = vector.load %arg19[%c0_81, %c0_82] : memref<1x128xf32, #tpu.memory_space<vmem>>, vector<1x128xf32>
      %167 = arith.addf %165, %166 : vector<1x128xf32>
      %168 = math.tanh %167 : vector<1x128xf32>
      %169 = arith.truncf %168 : vector<1x128xf32> to vector<1x128xbf16>
      %c0_83 = arith.constant 0 : index
      %c0_84 = arith.constant 0 : index
      %170 = vector.load %arg20[%c0_83, %c0_84] : memref<128x128xbf16, #tpu.memory_space<vmem>>, vector<128x128xbf16>
      %cst_85 = arith.constant dense<0.000000e+00> : vector<1x128xf32>
      %171 = tpu.matmul %169, %170, %cst_85 {dimension_numbers = #tpu.dot_dimension_numbers<[1], [0], [0], [1], [0, 0, 1, 1], [], []>} : vector<1x128xbf16>, vector<128x128xbf16>, vector<1x128xf32> -> vector<1x128xf32>
      %c0_86 = arith.constant 0 : index
      %c0_87 = arith.constant 0 : index
      %172 = vector.load %arg21[%c0_86, %c0_87] : memref<1x128xf32, #tpu.memory_space<vmem>>, vector<1x128xf32>
      %173 = arith.addf %171, %172 : vector<1x128xf32>
      %c0_88 = arith.constant 0 : index
      %c0_89 = arith.constant 0 : index
      %c0_90 = arith.constant 0 : index
      %174 = vector.load %arg23[%c0_88, %c0_89, %c0_90] : memref<1x1x128xf32, #tpu.memory_space<vmem>>, vector<1x1x128xf32>
      %175 = vector.shape_cast %174 : vector<1x1x128xf32> to vector<1x128xf32>
      %176 = vector.shape_cast %173 : vector<1x128xf32> to vector<1x1x128xf32>
      tpu.vector_store %arg23[%c0_88, %c0_89, %c0_90], %176 {strides = array<i32>} : memref<1x1x128xf32, #tpu.memory_space<vmem>>, vector<1x1x128xf32>,
    } else {
    }
    return
  }
  func.func @transform_0(%arg0: i32, %arg1: i32) -> (i32, i32, i32) {
    %c0_i32 = arith.constant 0 : i32
    %c0_i32_0 = arith.constant 0 : i32
    %c0_i32_1 = arith.constant 0 : i32
    return %arg0, %c0_i32, %c0_i32_0 : i32, i32, i32
  }
  func.func @transform_1(%arg0: i32, %arg1: i32) -> (i32, i32, i32) {
    %c0_i32 = arith.constant 0 : i32
    %c0_i32_0 = arith.constant 0 : i32
    %c0_i32_1 = arith.constant 0 : i32
    return %arg0, %c0_i32, %c0_i32_0 : i32, i32, i32
  }
  func.func @transform_2(%arg0: i32, %arg1: i32) -> (i32, i32) {
    %c0_i32 = arith.constant 0 : i32
    %c0_i32_0 = arith.constant 0 : i32
    %c0_i32_1 = arith.constant 0 : i32
    return %c0_i32, %c0_i32_0 : i32, i32
  }
  func.func @transform_3(%arg0: i32, %arg1: i32) -> (i32, i32) {
    %c0_i32 = arith.constant 0 : i32
    %c0_i32_0 = arith.constant 0 : i32
    %c0_i32_1 = arith.constant 0 : i32
    return %c0_i32, %c0_i32_0 : i32, i32
  }
  func.func @transform_4(%arg0: i32, %arg1: i32) -> (i32, i32, i32) {
    %c0_i32 = arith.constant 0 : i32
    %c0_i32_0 = arith.constant 0 : i32
    %c0_i32_1 = arith.constant 0 : i32
    return %arg1, %c0_i32, %c0_i32_0 : i32, i32, i32
  }
  func.func @transform_5(%arg0: i32, %arg1: i32) -> (i32, i32, i32) {
    %c0_i32 = arith.constant 0 : i32
    %c0_i32_0 = arith.constant 0 : i32
    %c0_i32_1 = arith.constant 0 : i32
    return %arg1, %c0_i32, %c0_i32_0 : i32, i32, i32
  }
  func.func @transform_6(%arg0: i32, %arg1: i32) -> (i32, i32, i32) {
    %c0_i32 = arith.constant 0 : i32
    %c0_i32_0 = arith.constant 0 : i32
    %c0_i32_1 = arith.constant 0 : i32
    return %arg1, %c0_i32, %c0_i32_0 : i32, i32, i32
  }
  func.func @transform_7(%arg0: i32, %arg1: i32) -> (i32, i32, i32) {
    %c0_i32 = arith.constant 0 : i32
    %c0_i32_0 = arith.constant 0 : i32
    %c0_i32_1 = arith.constant 0 : i32
    return %arg1, %c0_i32, %c0_i32_0 : i32, i32, i32
  }
  func.func @transform_8(%arg0: i32, %arg1: i32) -> (i32, i32, i32) {
    %c0_i32 = arith.constant 0 : i32
    %c0_i32_0 = arith.constant 0 : i32
    %c0_i32_1 = arith.constant 0 : i32
    return %arg1, %c0_i32, %c0_i32_0 : i32, i32, i32
  }
  func.func @transform_9(%arg0: i32, %arg1: i32) -> (i32, i32, i32) {
    %c0_i32 = arith.constant 0 : i32
    %c0_i32_0 = arith.constant 0 : i32
    %c0_i32_1 = arith.constant 0 : i32
    return %arg1, %c0_i32, %c0_i32_0 : i32, i32, i32
  }
  func.func @transform_10(%arg0: i32, %arg1: i32) -> (i32, i32, i32) {
    %c0_i32 = arith.constant 0 : i32
    %c0_i32_0 = arith.constant 0 : i32
    %c0_i32_1 = arith.constant 0 : i32
    return %arg1, %c0_i32, %c0_i32_0 : i32, i32, i32
  }
  func.func @transform_11(%arg0: i32, %arg1: i32) -> (i32, i32, i32) {
    %c0_i32 = arith.constant 0 : i32
    %c0_i32_0 = arith.constant 0 : i32
    %c0_i32_1 = arith.constant 0 : i32
    return %arg1, %c0_i32, %c0_i32_0 : i32, i32, i32
  }
  func.func @transform_12(%arg0: i32, %arg1: i32) -> (i32, i32, i32) {
    %c0_i32 = arith.constant 0 : i32
    %c0_i32_0 = arith.constant 0 : i32
    %c0_i32_1 = arith.constant 0 : i32
    return %arg1, %c0_i32, %c0_i32_0 : i32, i32, i32
  }
  func.func @transform_13(%arg0: i32, %arg1: i32) -> (i32, i32, i32) {
    %c0_i32 = arith.constant 0 : i32
    %c0_i32_0 = arith.constant 0 : i32
    %c0_i32_1 = arith.constant 0 : i32
    return %arg1, %c0_i32, %c0_i32_0 : i32, i32, i32
  }
  func.func @transform_14(%arg0: i32, %arg1: i32) -> (i32, i32, i32) {
    %c0_i32 = arith.constant 0 : i32
    %c0_i32_0 = arith.constant 0 : i32
    %c0_i32_1 = arith.constant 0 : i32
    return %arg1, %c0_i32, %c0_i32_0 : i32, i32, i32
  }
  func.func @transform_15(%arg0: i32, %arg1: i32) -> (i32, i32, i32) {
    %c0_i32 = arith.constant 0 : i32
    %c0_i32_0 = arith.constant 0 : i32
    %c0_i32_1 = arith.constant 0 : i32
    return %arg1, %c0_i32, %c0_i32_0 : i32, i32, i32
  }
  func.func @transform_16(%arg0: i32, %arg1: i32) -> (i32, i32) {
    %c0_i32 = arith.constant 0 : i32
    %c0_i32_0 = arith.constant 0 : i32
    %c0_i32_1 = arith.constant 0 : i32
    return %c0_i32, %c0_i32_0 : i32, i32
  }
  func.func @transform_17(%arg0: i32, %arg1: i32) -> (i32, i32) {
    %c0_i32 = arith.constant 0 : i32
    %c0_i32_0 = arith.constant 0 : i32
    %c0_i32_1 = arith.constant 0 : i32
    return %c0_i32, %c0_i32_0 : i32, i32
  }
  func.func @transform_18(%arg0: i32, %arg1: i32) -> (i32, i32) {
    %c0_i32 = arith.constant 0 : i32
    %c0_i32_0 = arith.constant 0 : i32
    %c0_i32_1 = arith.constant 0 : i32
    return %c0_i32, %c0_i32_0 : i32, i32
  }
  func.func @transform_19(%arg0: i32, %arg1: i32) -> (i32, i32) {
    %c0_i32 = arith.constant 0 : i32
    %c0_i32_0 = arith.constant 0 : i32
    %c0_i32_1 = arith.constant 0 : i32
    return %c0_i32, %c0_i32_0 : i32, i32
  }
  func.func @transform_20(%arg0: i32, %arg1: i32) -> (i32, i32, i32) {
    %c0_i32 = arith.constant 0 : i32
    %c0_i32_0 = arith.constant 0 : i32
    %c0_i32_1 = arith.constant 0 : i32
    return %arg0, %c0_i32, %c0_i32_0 : i32, i32, i32
  }
  func.func @transform_21(%arg0: i32, %arg1: i32) -> (i32, i32, i32) {
    %c0_i32 = arith.constant 0 : i32
    %c0_i32_0 = arith.constant 0 : i32
    %c0_i32_1 = arith.constant 0 : i32
    return %arg0, %c0_i32, %c0_i32_0 : i32, i32, i32
  }
}

</mosaic_0001>

<bundles_post_ra>
// kernel: bert_pos_forward.1
= control target key start
LH: loop header
LB: loop body
LE: loop exit
PB: predicated region body
PF: predicated region fallthrough
CT: control target
= control target key end

     0   :  { %s5387_s0 = inlined_call_operand.vmem [shape: f32[2,16,128], index: 0, kind: input, shape index: {}]   ;;  %s5388_s1 = inlined_call_operand.vmem [shape: f32[2,1,128], index: 1, kind: input, shape index: {}]   ;;  %s5389_s2 = inlined_call_operand.vmem [shape: f32[1,128], index: 2, kind: input, shape index: {}]   ;;  %s5390_s3 = inlined_call_operand.hbm [shape: f32[1,128], index: 3, kind: input, shape index: {}]   ;;  %s5391_s4 = inlined_call_operand.vmem [shape: bf16[2,128,384], index: 4, kind: input, shape index: {}]   ;;  %s5392_s5 = inlined_call_operand.vmem [shape: f32[2,1,384], index: 5, kind: input, shape index: {}]   ;;  %s5393_s6 = inlined_call_operand.hbm [shape: bf16[2,128,128], index: 6, kind: input, shape index: {}]   ;;  %s5394_s7 = inlined_call_operand.vmem [shape: f32[2,1,128], index: 7, kind: input, shape index: {}]   ;;  %s5395_s8 = inlined_call_operand.vmem [shape: f32[2,1,128], index: 8, kind: input, shape index: {}]   ;;  %s5396_s9 = inlined_call_operand.hbm [shape: f32[2,1,128], index: 9, kind: input, shape index: {}]   ;;  %s5397_s10 = inlined_call_operand.hbm [shape: bf16[2,128,512], index: 10, kind: input, shape index: {}]   ;;  %s5398_s11 = inlined_call_operand.vmem [shape: f32[2,1,512], index: 11, kind: input, shape index: {}]   ;;  %s5399_s12 = inlined_call_operand.hbm [shape: bf16[2,512,128], index: 12, kind: input, shape index: {}]   ;;  %s5400_s13 = inlined_call_operand.vmem [shape: f32[2,1,128], index: 13, kind: input, shape index: {}]   ;;  %s5401_s14 = inlined_call_operand.hbm [shape: f32[2,1,128], index: 14, kind: input, shape index: {}]   ;;  %s5402_s15 = inlined_call_operand.hbm [shape: f32[2,1,128], index: 15, kind: input, shape index: {}]   ;;  %s5403_s16 = inlined_call_operand.vmem [shape: bf16[128,128], index: 16, kind: input, shape index: {}]   ;;  %s5404_s17 = inlined_call_operand.hbm [shape: f32[1,128], index: 17, kind: input, shape index: {}]   ;;  %s5405_s18 = inlined_call_operand.hbm [shape: bf16[128,128], index: 18, kind: input, shape index: {}]   ;;  %s5406_s19 = inlined_call_operand.hbm [shape: f32[1,128], index: 19, kind: input, shape index: {}]   ;;  %s5407_s20 = inlined_call_operand.hbm [shape: f32[2,16,128], index: 20, kind: output, shape index: {0}]   ;;  %s5408_s21 = inlined_call_operand.hbm [shape: f32[2,1,128], index: 21, kind: output, shape index: {1}]  }
   0x1   :  { %5456 = sst [smem:[#allocation50_spill]] %s5387_s0 }
   0x2   :  { %5457 = sst [smem:[#allocation51_spill]] %s5388_s1 }
   0x3   :  { %5458 = sst [smem:[#allocation52_spill]] %s5389_s2 }
   0x4   :  { %5459 = sst [smem:[#allocation53_spill]] %s5390_s3 }
   0x5   :  { %5460 = sst [smem:[#allocation54_spill]] %s5391_s4 }
   0x6   :  { %5461 = sst [smem:[#allocation55_spill]] %s5392_s5 }
   0x7   :  { %5462 = sst [smem:[#allocation56_spill]] %s5393_s6 }
   0x8   :  { %5463 = sst [smem:[#allocation57_spill]] %s5394_s7 }
   0x9   :  { %5464 = sst [smem:[#allocation58_spill]] %s5395_s8 }
   0xa   :  { %5465 = sst [smem:[#allocation59_spill]] %s5396_s9 }
   0xb   :  { %5466 = sst [smem:[#allocation60_spill]] %s5397_s10 }
   0xc   :  { %5467 = sst [smem:[#allocation61_spill]] %s5398_s11 }
   0xd   :  { %5468 = sst [smem:[#allocation62_spill]] %s5399_s12 }
   0xe   :  { %5469 = sst [smem:[#allocation63_spill]] %s5400_s13 }
   0xf   :  { %5470 = sst [smem:[#allocation64_spill]] %s5401_s14 }
  0x10   :  { %5471 = sst [smem:[#allocation65_spill]] %s5402_s15 }
  0x11   :  { %5472 = sst [smem:[#allocation66_spill]] %s5403_s16 }
  0x12   :  { %5473 = sst [smem:[#allocation67_spill]] %s5404_s17 }
  0x13   :  { %5474 = sst [smem:[#allocation68_spill]] %s5405_s18 }
  0x14   :  { %5475 = sst [smem:[#allocation69_spill]] %s5406_s19 }
  0x15   :  { %5476 = sst [smem:[#allocation70_spill]] %s5407_s20 }
  0x16   :  { %5477 = sst [smem:[#allocation71_spill]] %s5408_s21 }
  0x17   :  { %27 = vsyncpa [#allocation4], 0 }
  0x18   :  { %28 = vsyncpa [#allocation7], 0 }
  0x19   :  { %30 = vsyncpa [#allocation7 + $0x1], 0 }
  0x1a   :  { %31 = vsyncpa [#allocation10], 0 }
  0x1b   :  { %33 = vsyncpa [#allocation10 + $0x1], 0 }
  0x1c   :  { %34 = vsyncpa [#allocation13], 0 }
  0x1d   :  { %36 = vsyncpa [#allocation13 + $0x1], 0 }
  0x1e   :  { %37 = vsyncpa [#allocation16], 0 }
  0x1f   :  { %38 = vsyncpa [#allocation19], 0 }
  0x20   :  { %39 = vsyncpa [#allocation5], 0 }
  0x21   :  { %41 = vsyncpa [#allocation5 + $0x1], 0 }
  0x22   :  { %42 = vsyncpa [#allocation22], 0 }
  0x23   :  { %44 = vsyncpa [#allocation22 + $0x1], 0  ;;  %s4473_s2 = smov 0   ;;  %s4475_s25 = smov 0  }
  0x24   :  { %s4477_s26 = smov 0   ;;  %s4479_s27 = smov 0  }
  0x25   :  { %s4481_s3 = smov 0   ;;  %s4483_s28 = smov 0  }
  0x26   :  { %s4485_s29 = smov 0   ;;  %s4487_s0 = smov 0  }
  0x27   :  { %s4489_s4 = smov 0   ;;  %s4491_s30 = smov 0  }
  0x28   :  { %s4493_s5 = smov 0  }
  0x29 LB: > { %5478 = sst [smem:[#allocation31_spill]] %s4297_s2  ;;  %s4527_s22 = sadd.s32 4294967295, %s4337_s5   ;;  %s4337_s5 = sphi %s4493_s5, %s50_s5   ;;  %s4333_s30 = sphi %s4491_s30, %s5583_s30   ;;  %s4329_s4 = sphi %s4489_s4, %s5582_s4   ;;  %s4325_s0 = sphi %s4487_s0, %s5581_s0   ;;  %s4321_s29 = sphi %s4485_s29, %s5580_s29   ;;  %s4317_s28 = sphi %s4483_s28, %s5579_s28   ;;  %s4313_s3 = sphi %s4481_s3, %s5578_s3   ;;  %s4309_s27 = sphi %s4479_s27, %s5577_s27   ;;  %s4305_s26 = sphi %s4477_s26, %s5576_s26   ;;  %s4301_s25 = sphi %s4475_s25, %s5575_s25   ;;  %s4297_s2 = sphi %s4473_s2, %s5574_s2  }
  0x2a   : > { %5479 = sst [smem:[#allocation32_spill]] %s4301_s25  ;;  %s3140_s23 = sadd.s32 4294967294, %s4337_s5  }
  0x2b   : > { %5480 = sst [smem:[#allocation33_spill]] %s4305_s26  ;;  %p228_p0 = scmp.ne.s32.totalorder %s4313_s3, %s4309_s27 }
  0x2c   : > { %5481 = sst [smem:[#allocation34_spill]] %s4313_s3  ;;  %p5418_p1 = scmp.eq.s32.totalorder %s4527_s22, 0 }
  0x2d   : > { %5482 = sst [smem:[#allocation35_spill]] %s4317_s28  ;;  %p569_p2 = scmp.ne.s32.totalorder %s4305_s26, %s4301_s25 }
  0x2e   : > { %5483 = sst [smem:[#allocation36_spill]] %s4321_s29  ;;  %p4537_p3 = por %p5418_p1, %p228_p0 }
  0x2f   : > { %5484 = sst [smem:[#allocation37_spill]] %s4325_s0  ;;  %p570_p4 = scmp.eq.s32.totalorder %s4527_s22, 3 }
  0x30   : > { %5485 = sst [smem:[#allocation38_spill]] %s4329_s4  ;;  %p575_p5 = scmp.ne.s32.totalorder %s4301_s25, %s4297_s2 }
  0x31   : > { %5486 = sst [smem:[#allocation39_spill]] %s4333_s30  ;;  %p576_p6 = scmp.eq.s32.totalorder %s3140_s23, 3 }
  0x32   : > { %5487 = sst [smem:[#allocation40_spill]] %s4337_s5  ;;  %p4544_p7 = por %p570_p4, %p569_p2 }
  0x33   : > { %5488 = sst [smem:[#allocation41_spill]] %s4527_s22  ;;  %p3141_p8 = scmp.ge.s32.totalorder %s4337_s5, 1 }
  0x34   : > { %s5489_s24 = scalar_select %p4537_p3, 1, 0 }
  0x35   : > { %s5491_s21 = scalar_select %p4544_p7, 1, 0 }
  0x36   : > { %5490 = sst [smem:[#allocation42_spill]] %s5489_s24  ;;  %p4549_p9 = por %p576_p6, %p575_p5 }
  0x37   : > { %5492 = sst [smem:[#allocation43_spill]] %s5491_s21  ;;  %p609_p10 = scmp.lt.s32.totalorder %s4337_s5, 5 }
  0x38   : > { %s5493_s27 = scalar_select %p4549_p9, 1, 0 }
  0x39   : > { %p4554_p11 = pnand %p3141_p8, %p609_p10  ;;  %s4339_s20 = smov [#allocation15]  }
  0x3a   : > { %5494 = sst [smem:[#allocation44_spill]] %s5493_s27  ;;  %s639_s16 = sshll.u32 %s4339_s20, 4  ;;  %s640_s16 = int_to_ptr.vmem [resolvable:$true] %s639_s16 }
  0x3b   : > { %s5495_s1 = scalar_select %p4554_p11, 1, 0 }
  0x3c   : > { %p3536_p12 = pneg %p4554_p11  ;;  %s59_s2 = sadd.s32 1, %s4329_s4 }
  0x3d   : > { %s5497_s17 = sld [smem:[#allocation67_spill]] }
  0x3e   : > { %p4562_p13 = pnand %p3536_p12, %p5418_p1 }
  0x40   : > { %s5496_s23 = scalar_select %p4562_p13, 1, 0 }
  0x41   : > { %p4575_p2 = pneg %p4562_p13 }
  0x43   : > { %s3871_s13 = scalar_lea.hbm %s5497_s17, 16 }
  0x44   : > { %p3872_p0 = scmp.ne.s32.totalorder %s5497_s17, %s3871_s13  ;;  %p3878_p6 = scmp.lt.u32.totalorder %s3871_s13, %s5497_s17 }
  0x45   : > { %s5498_s20 = scalar_select %p4575_p2, 1, 0 }
  0x46   : > { %p3874_p4 = pnand %p4575_p2, %p3872_p0 }
  0x48   : > { %p3875_p5 = pneg %p3874_p4 }
  0x4a   : > { %p3880_p8 = pnand %p3878_p6, %p3875_p5 }
  0x4c   : > { %3883 = shalt.err (!%p3880_p8)
}
  0x4d   : > { %s3884_s21 = scalar_lea.vmem %s640_s16, 16  ;;  %s3891_s8 = scalar_lea.vmem %s640_s16, 32 }
  0x4e   : > { %p3885_p10 = scmp.ne.s32.totalorder %s640_s16, %s3884_s21  ;;  %p3892_p9 = scmp.lt.s32.totalorder %s640_s16, %s640_s16 }
  0x4f   : > { %p3893_p7 = scmp.lt.s32.totalorder %s3891_s8, %s3884_s21 }
  0x50   : > { %p3887_p12 = pnand %p3885_p10, %p4575_p2 }
  0x51   : > { %p3894_p3 = por %p3893_p7, %p3892_p9 }
  0x52   : > { %p3888_p1 = pneg %p3887_p12 }
  0x54   : > { %p3895_p11 = pnand %p3894_p3, %p3888_p1 }
  0x56   : > { %3898 = shalt.err (!%p3895_p11)
}
  0x57   : > { %3542 = dma.hbm_to_vmem [thread:$0]  (!%p4562_p13), %s5497_s17, 16, %s640_s16, [#allocation16]  }
  0x58   : > { %p60_p0 = scmp.ge.s32.totalorder %s59_s2, 2  ;;  %s62_s7 = sadd.s32 1, %s4333_s30 }
  0x59   : > { %s215_s13 = sadd.s32 1, %s4317_s28  ;;  %p222_p1 = scmp.ne.s32.totalorder %s4317_s28, %s4313_s3 }
  0x5a   : > { %s5585_s2 = smov (%p60_p0, %s59_s2), 0  ;;  %s5587_s7 = smov (!%p60_p0, %s62_s7), %s4333_s30 }
  0x5b   : > { %5499 = sst [smem:[#allocation45_spill]] %s5585_s2  ;;  %s212_s29 = ssub.s32 %s4329_s4, %s5585_s2 }
  0x5c   : > { %p223_p3 = scmp.eq.s32.totalorder %s4337_s5, 0  ;;  %p64_p7 = scmp.ge.s32.totalorder %s5587_s7, 2 }
  0x5d   : > { %p213_p9 = scmp.eq.s32.totalorder %s212_s29, 0  ;;  %p3579_p5 = scmp.lt.s32.totalorder %s4337_s5, 4 }
  0x5e   : > { %p4601_p11 = por %p223_p3, %p222_p1  ;;  %s5589_s7 = smov (%p64_p7, %s5587_s7), 0 }
  0x5f   : > { %5501 = sst [smem:[#allocation46_spill]] %s5589_s7  ;;  %s556_s8 = ssub.s32 %s4333_s30, %s5589_s7 }
  0x60   : > { %s4608_s21 = scalar_select %p213_p9, %s4317_s28, %s215_s13  }
  0x61   : > { %p557_p4 = scmp.eq.s32.totalorder %s556_s8, 0  ;;  %s4614_s11 = sand.u32 1, %s4337_s5  }
  0x62   : > { %5502 = sst [smem:[#allocation47_spill]] %s4608_s21  ;;  %s4617_s27 = sand.u32 1, %s4317_s28  }
  0x63   : > { %s5503_s17 = sadd.s32 1, %s4305_s26  ;;  %s3147_s2 = sshll.u32 %s4617_s27, 6 }
  0x64   : > { %s4622_s29 = scalar_select %p557_p4, %s4305_s26, %s5503_s17  }
  0x65   : > { %s3305_s0 = sshll.u32 %s4329_s4, 10  ;;  %s5505_s6 = sld [smem:[#allocation56_spill]] }
  0x66   : > { %5504 = sst [smem:[#allocation48_spill]] %s4622_s29  ;;  %s707_s8 = scalar_lea.vmem [#allocation6], %s3147_s2 }
  0x67   : > { %s714_s7 = sshll.u32 %s707_s8, 4  ;;  %p4635_p6 = pnand %p3579_p5, %p4601_p11  ;;  %s4631_s7 = int_to_ptr.vmem [resolvable:$true] %s714_s7 }
  0x68   : > { %s5438_s21 = scalar_lea.sflag [#allocation7], %s4614_s11 }
  0x69   : > { %s5506_s30 = scalar_select %p4635_p6, 1, 0 }
  0x6a   : > { %p4645_p10 = pneg %p4635_p6 }
  0x6b   : > { %s4629_s13 = scalar_lea.hbm %s5505_s6, %s3305_s0  ;;  %s3904_s24 = scalar_lea.hbm %s5505_s6, 2048 }
  0x6c   : > { %s3899_s28 = scalar_lea.hbm %s4629_s13, 1024  ;;  %p3905_p1 = scmp.lt.u32.totalorder %s4629_s13, %s5505_s6 }
  0x6d   : > { %p3900_p8 = scmp.ne.s32.totalorder %s4629_s13, %s3899_s28  ;;  %p3906_p3 = scmp.lt.u32.totalorder %s3904_s24, %s3899_s28 }
  0x6e   : > { %s5507_s25 = scalar_select %p4645_p10, 1, 0 }
  0x6f   : > { %p3902_p12 = pnand %p4645_p10, %p3900_p8  ;;  %p3907_p7 = por %p3906_p3, %p3905_p1 }
  0x70   : > { %p3908_p9 = scmp.lt.u32.totalorder %s3899_s28, %s4629_s13 }
  0x71   : > { %p3903_p0 = pneg %p3902_p12 }
  0x72   : > { %p3909_p11 = por %p3908_p9, %p3907_p7 }
  0x74   : > { %p3910_p4 = pnand %p3909_p11, %p3903_p0 }
  0x76   : > { %3913 = shalt.err (!%p3910_p4)
}
  0x77   : > { %s3914_s17 = scalar_lea.vmem %s4631_s7, 1024  ;;  %s4340_s2 = smov [#allocation6]  }
  0x78   : > { %p3915_p5 = scmp.ne.s32.totalorder %s4631_s7, %s3914_s17  ;;  %s3919_s0 = sshll.u32 %s4340_s2, 4  ;;  %s3920_s0 = int_to_ptr.vmem [resolvable:$false] %s3919_s0 }
  0x79   : > { %s3921_s16 = scalar_lea.vmem %s3920_s0, 2048  ;;  %p3922_p13 = scmp.lt.s32.totalorder %s4631_s7, %s3920_s0 }
  0x7a   : > { %p3917_p8 = pnand %p3915_p5, %p4645_p10  ;;  %p3923_p2 = scmp.lt.s32.totalorder %s3921_s16, %s3914_s17 }
  0x7c   : > { %p3918_p12 = pneg %p3917_p8  ;;  %p3924_p1 = por %p3923_p2, %p3922_p13 }
  0x7e   : > { %p3925_p3 = pnand %p3924_p1, %p3918_p12 }
  0x80   : > { %3928 = shalt.err (!%p3925_p3)
}
  0x81   : > { %s5439_s28 = smov 64   ;;  %s5441_s24 = smov 4  }
  0x82   : > { %3552 = dma.hbm_to_vmem [thread:$0]  (!%p4635_p6), %s4629_s13, 1024, %s4631_s7, %s5438_s21, %s5439_s28, %s5439_s28, %s5441_s24  }
  0x83   : > { %s3306_s17 = sshll.u32 %s4329_s4, 12  ;;  %s5508_s8 = sshll.u32 %s4617_s27, 8 }
  0x84   : > { %s757_s2 = scalar_lea.vmem [#allocation9], %s5508_s8  ;;  %s5509_s10 = sld [smem:[#allocation60_spill]] }
  0x85   : > { %s764_s0 = sshll.u32 %s757_s2, 4  ;;  %s5446_s26 = scalar_lea.sflag [#allocation10], %s4614_s11  ;;  %s4683_s0 = int_to_ptr.vmem [resolvable:$true] %s764_s0 }
  0x8a   : > { %s4681_s29 = scalar_lea.hbm %s5509_s10, %s3306_s17  ;;  %s3934_s8 = scalar_lea.hbm %s5509_s10, 8192 }
  0x8b   : > { %s3929_s5 = scalar_lea.hbm %s4681_s29, 4096  ;;  %p3935_p7 = scmp.lt.u32.totalorder %s4681_s29, %s5509_s10 }
  0x8c   : > { %p3930_p13 = scmp.ne.s32.totalorder %s4681_s29, %s3929_s5  ;;  %p3936_p9 = scmp.lt.u32.totalorder %s3934_s8, %s3929_s5 }
  0x8d   : > { %p3938_p4 = scmp.lt.u32.totalorder %s3929_s5, %s4681_s29 }
  0x8e   : > { %p3932_p2 = pnand %p3930_p13, %p4645_p10  ;;  %p3937_p11 = por %p3936_p9, %p3935_p7 }
  0x90   : > { %p3933_p0 = pneg %p3932_p2  ;;  %p3939_p5 = por %p3938_p4, %p3937_p11 }
  0x92   : > { %p3940_p8 = pnand %p3939_p5, %p3933_p0 }
  0x94   : > { %3943 = shalt.err (!%p3940_p8)
}
  0x95   : > { %s3944_s16 = scalar_lea.vmem %s4683_s0, 4096  ;;  %s4343_s7 = smov [#allocation9]  }
  0x96   : > { %p3945_p12 = scmp.ne.s32.totalorder %s4683_s0, %s3944_s16  ;;  %s3949_s13 = sshll.u32 %s4343_s7, 4  ;;  %s3950_s13 = int_to_ptr.vmem [resolvable:$false] %s3949_s13 }
  0x97   : > { %s3951_s2 = scalar_lea.vmem %s3950_s13, 8192  ;;  %p3952_p13 = scmp.lt.s32.totalorder %s4683_s0, %s3950_s13 }
  0x98   : > { %p3947_p1 = pnand %p3945_p12, %p4645_p10  ;;  %p3953_p2 = scmp.lt.s32.totalorder %s3951_s2, %s3944_s16 }
  0x9a   : > { %p3948_p3 = pneg %p3947_p1  ;;  %p3954_p7 = por %p3953_p2, %p3952_p13 }
  0x9c   : > { %p3955_p9 = pnand %p3954_p7, %p3948_p3 }
  0x9e   : > { %3958 = shalt.err (!%p3955_p9)
}
  0x9f   : > { %s4344_s5 = smov 256   ;;  %s4345_s8 = smov 16  }
  0xa0   : > { %3558 = dma.hbm_to_vmem [thread:$0]  (!%p4635_p6), %s4681_s29, 4096, %s4683_s0, %s5446_s26, %s4344_s5, %s4344_s5, %s4345_s8  }
  0xa1   : > { %s5510_s12 = sld [smem:[#allocation62_spill]]  ;;  %s5511_s13 = sshll.u32 %s4617_s27, 8 }
  0xa2   : > { %s785_s2 = scalar_lea.vmem [#allocation11], %s5511_s13  ;;  %s4719_s28 = sshll.u32 %s4329_s4, 4 }
  0xa3   : > { %s792_s21 = sshll.u32 %s785_s2, 4  ;;  %s5512_s14 = sld [smem:[#allocation64_spill]]  ;;  %s4721_s21 = int_to_ptr.vmem [resolvable:$true] %s792_s21 }
  0xa4   : > { %s811_s29 = scalar_lea.vmem [#allocation12], %s4617_s27  ;;  %s5447_s0 = scalar_lea.sflag [#allocation13], %s4614_s11 }
  0xa7   : > { %s4714_s7 = scalar_lea.hbm %s5510_s12, %s3306_s17  ;;  %s818_s17 = sshll.u32 %s811_s29, 4  ;;  %s819_s17 = int_to_ptr.vmem [resolvable:$true] %s818_s17 }
  0xa9   : > { %s4727_s3 = scalar_lea.hbm %s5512_s14, %s4719_s28  ;;  %s3964_s16 = scalar_lea.hbm %s5512_s14, 32 }
  0xaa   : > { %s3959_s5 = scalar_lea.hbm %s4727_s3, 16  ;;  %p3965_p5 = scmp.lt.u32.totalorder %s4727_s3, %s5512_s14 }
  0xab   : > { %p3960_p0 = scmp.ne.s32.totalorder %s4727_s3, %s3959_s5  ;;  %p3966_p8 = scmp.lt.u32.totalorder %s3964_s16, %s3959_s5 }
  0xac   : > { %p3968_p1 = scmp.lt.u32.totalorder %s3959_s5, %s4727_s3 }
  0xad   : > { %p3962_p11 = pnand %p3960_p0, %p4645_p10  ;;  %p3967_p12 = por %p3966_p8, %p3965_p5 }
  0xaf   : > { %p3963_p4 = pneg %p3962_p11  ;;  %p3969_p3 = por %p3968_p1, %p3967_p12 }
  0xb1   : > { %p3970_p13 = pnand %p3969_p3, %p3963_p4 }
  0xb3   : > { %3973 = shalt.err (!%p3970_p13)
}
  0xb4   : > { %s3974_s13 = scalar_lea.vmem %s819_s17, 16  ;;  %s4346_s2 = smov [#allocation12]  }
  0xb5   : > { %p3975_p2 = scmp.ne.s32.totalorder %s819_s17, %s3974_s13  ;;  %s3979_s29 = sshll.u32 %s4346_s2, 4  ;;  %s3980_s29 = int_to_ptr.vmem [resolvable:$false] %s3979_s29 }
  0xb6   : > { %s3981_s8 = scalar_lea.vmem %s3980_s29, 32  ;;  %p3982_p0 = scmp.lt.s32.totalorder %s819_s17, %s3980_s29 }
  0xb7   : > { %p3977_p7 = pnand %p3975_p2, %p4645_p10  ;;  %p3983_p11 = scmp.lt.s32.totalorder %s3981_s8, %s3974_s13 }
  0xb9   : > { %p3978_p9 = pneg %p3977_p7  ;;  %p3984_p6 = por %p3983_p11, %p3982_p0 }
  0xbb   : > { %p3985_p5 = pnand %p3984_p6, %p3978_p9 }
  0xbd   : > { %3988 = shalt.err (!%p3985_p5)
}
  0xbe   : > { %p5513_p8 = scmp.ne.s32.totalorder %s5506_s30, 0  ;;  %s4347_s5 = smov [#allocation3]  }
  0xbf   : > { %s625_s6 = sshll.u32 %s4347_s5, 4  ;;  %s4348_s16 = smov [#allocation17]   ;;  %s626_s6 = int_to_ptr.vmem [resolvable:$true] %s625_s6 }
  0xc0   : > { %3564 = dma.hbm_to_vmem [thread:$0]  (!%p5513_p8), %s4727_s3, 16, %s819_s17, %s5447_s0  }
  0xc1   : > { %s649_s10 = sshll.u32 %s4348_s16, 4  ;;  %s5514_s13 = sld [smem:[#allocation53_spill]]  ;;  %s4750_s10 = int_to_ptr.vmem [resolvable:$true] %s649_s10 }
  0xc2   : > { %p5515_p4 = scmp.ne.s32.totalorder %s5498_s20, 0 }
  0xc7   : > { %s3989_s29 = scalar_lea.hbm %s5514_s13, 16 }
  0xc8   : > { %p3990_p6 = scmp.ne.s32.totalorder %s5514_s13, %s3989_s29  ;;  %p3996_p3 = scmp.lt.u32.totalorder %s3989_s29, %s5514_s13 }
  0xca   : > { %p3992_p12 = pnand %p3990_p6, %p5515_p4 }
  0xcc   : > { %p3993_p1 = pneg %p3992_p12 }
  0xce   : > { %p3998_p13 = pnand %p3996_p3, %p3993_p1 }
  0xd0   : > { %4001 = shalt.err (!%p3998_p13)
}
  0xd1   : > { %s4002_s17 = scalar_lea.vmem %s626_s6, 16  ;;  %s4009_s5 = scalar_lea.vmem %s626_s6, 32 }
  0xd2   : > { %p4003_p2 = scmp.ne.s32.totalorder %s626_s6, %s4002_s17  ;;  %p4010_p0 = scmp.lt.s32.totalorder %s626_s6, %s626_s6 }
  0xd3   : > { %p4011_p11 = scmp.lt.s32.totalorder %s4009_s5, %s4002_s17 }
  0xd4   : > { %p4005_p7 = pnand %p4003_p2, %p5515_p4 }
  0xd5   : > { %p4012_p5 = por %p4011_p11, %p4010_p0 }
  0xd6   : > { %p4006_p9 = pneg %p4005_p7 }
  0xd8   : > { %p4013_p8 = pnand %p4012_p5, %p4006_p9 }
  0xda   : > { %4016 = shalt.err (!%p4013_p8)
}
  0xdb   : > { %p5516_p6 = scmp.ne.s32.totalorder %s5496_s23, 0  ;;  %s5517_s18 = sld [smem:[#allocation68_spill]] }
  0xdd   : > { %3539 = dma.hbm_to_vmem [thread:$0]  (!%p5516_p6), %s5514_s13, 16, %s626_s6, [#allocation4]  }
  0xe1   : > { %s4017_s2 = scalar_lea.hbm %s5517_s18, 1024 }
  0xe2   : > { %p4018_p12 = scmp.ne.s32.totalorder %s5517_s18, %s4017_s2  ;;  %p4024_p8 = scmp.lt.u32.totalorder %s4017_s2, %s5517_s18 }
  0xe4   : > { %p4020_p1 = pnand %p4018_p12, %p5515_p4 }
  0xe6   : > { %p4021_p3 = pneg %p4020_p1 }
  0xe8   : > { %p4026_p13 = pnand %p4024_p8, %p4021_p3 }
  0xea   : > { %4029 = shalt.err (!%p4026_p13)
}
  0xeb   : > { %s4030_s6 = scalar_lea.vmem %s4750_s10, 1024  ;;  %p4038_p0 = scmp.lt.s32.totalorder %s4750_s10, %s4750_s10 }
  0xec   : > { %p4031_p2 = scmp.ne.s32.totalorder %s4750_s10, %s4030_s6  ;;  %p4039_p11 = scmp.lt.s32.totalorder %s4030_s6, %s4030_s6 }
  0xee   : > { %p4033_p7 = pnand %p4031_p2, %p5515_p4  ;;  %p4040_p5 = por %p4039_p11, %p4038_p0 }
  0xf0   : > { %p4034_p9 = pneg %p4033_p7 }
  0xf2   : > { %p4041_p12 = pnand %p4040_p5, %p4034_p9 }
  0xf4   : > { %4044 = shalt.err (!%p4041_p12)
}
  0xf5   : > { %s5518_s5 = smov 4   ;;  %s5519_s26 = smov 64  }
  0xf6   : > { %3545 = dma.hbm_to_vmem [thread:$0]  (!%p5516_p6), %s5517_s18, 1024, %s4750_s10, [#allocation16], %s5519_s26, %s5519_s26, %s5518_s5  }
  0xf7   : > { %s4349_s24 = smov [#allocation18]   ;;  %s5520_s9 = sld [smem:[#allocation59_spill]] }
  0xf8   : > { %s663_s2 = sshll.u32 %s4349_s24, 4  ;;  %s739_s17 = scalar_lea.vmem [#allocation8], %s4617_s27  ;;  %s664_s2 = int_to_ptr.vmem [resolvable:$true] %s663_s2 }
  0xf9   : > { %s746_s6 = sshll.u32 %s739_s17, 4  ;;  %s5521_s19 = sld [smem:[#allocation69_spill]]  ;;  %s747_s6 = int_to_ptr.vmem [resolvable:$true] %s746_s6 }
  0xfd   : > { %s4800_s3 = scalar_lea.hbm %s5520_s9, %s4719_s28 }
  0xff   : > { %s4045_s4 = scalar_lea.hbm %s5521_s19, 16 }
 0x100   : > { %p4046_p1 = scmp.ne.s32.totalorder %s5521_s19, %s4045_s4  ;;  %p4052_p13 = scmp.lt.u32.totalorder %s4045_s4, %s5521_s19 }
 0x102   : > { %p4048_p3 = pnand %p4046_p1, %p5515_p4 }
 0x104   : > { %p4049_p8 = pneg %p4048_p3 }
 0x106   : > { %p4054_p2 = pnand %p4052_p13, %p4049_p8 }
 0x108   : > { %4057 = shalt.err (!%p4054_p2)
}
 0x109   : > { %s4058_s24 = scalar_lea.vmem %s664_s2, 16  ;;  %s4065_s0 = scalar_lea.vmem %s664_s2, 32 }
 0x10a   : > { %p4059_p7 = scmp.ne.s32.totalorder %s664_s2, %s4058_s24  ;;  %p4066_p11 = scmp.lt.s32.totalorder %s664_s2, %s664_s2 }
 0x10b   : > { %p4067_p5 = scmp.lt.s32.totalorder %s4065_s0, %s4058_s24 }
 0x10c   : > { %p4061_p9 = pnand %p4059_p7, %p5515_p4 }
 0x10d   : > { %p4068_p12 = por %p4067_p5, %p4066_p11 }
 0x10e   : > { %p4062_p0 = pneg %p4061_p9 }
 0x110   : > { %p4069_p10 = pnand %p4068_p12, %p4062_p0 }
 0x112   : > { %4072 = shalt.err (!%p4069_p10)
}
 0x113   : > { %3548 = dma.hbm_to_vmem [thread:$0]  (!%p5516_p6), %s5521_s19, 16, %s664_s2, [#allocation19]  }
 0x114   : > { %s4073_s4 = scalar_lea.hbm %s4800_s3, 16  ;;  %p5522_p1 = scmp.ne.s32.totalorder %s5507_s25, 0 }
 0x115   : > { %p4074_p4 = scmp.ne.s32.totalorder %s4800_s3, %s4073_s4  ;;  %s4078_s8 = scalar_lea.hbm %s5520_s9, 32 }
 0x116   : > { %p4079_p10 = scmp.lt.u32.totalorder %s4800_s3, %s5520_s9  ;;  %p4080_p13 = scmp.lt.u32.totalorder %s4078_s8, %s4073_s4 }
 0x117   : > { %p4076_p3 = pnand %p4074_p4, %p5522_p1  ;;  %p4082_p7 = scmp.lt.u32.totalorder %s4073_s4, %s4800_s3 }
 0x118   : > { %p4081_p2 = por %p4080_p13, %p4079_p10 }
 0x119   : > { %p4077_p8 = pneg %p4076_p3 }
 0x11a   : > { %p4083_p9 = por %p4082_p7, %p4081_p2 }
 0x11c   : > { %p4084_p0 = pnand %p4083_p9, %p4077_p8 }
 0x11e   : > { %4087 = shalt.err (!%p4084_p0)
}
 0x11f   : > { %s4088_s2 = scalar_lea.vmem %s747_s6, 16  ;;  %s4350_s16 = smov [#allocation8]  }
 0x120   : > { %p4089_p6 = scmp.ne.s32.totalorder %s747_s6, %s4088_s2  ;;  %s4093_s10 = sshll.u32 %s4350_s16, 4  ;;  %s4094_s10 = int_to_ptr.vmem [resolvable:$false] %s4093_s10 }
 0x121   : > { %s4095_s14 = scalar_lea.vmem %s4094_s10, 32  ;;  %p4096_p12 = scmp.lt.s32.totalorder %s747_s6, %s4094_s10 }
 0x122   : > { %p4091_p11 = pnand %p4089_p6, %p5522_p1  ;;  %p4097_p4 = scmp.lt.s32.totalorder %s4095_s14, %s4088_s2 }
 0x124   : > { %p4092_p5 = pneg %p4091_p11  ;;  %p4098_p3 = por %p4097_p4, %p4096_p12 }
 0x126   : > { %p4099_p10 = pnand %p4098_p3, %p4092_p5 }
 0x128   : > { %4102 = shalt.err (!%p4099_p10)
}
 0x129   : > { %p5523_p13 = scmp.ne.s32.totalorder %s5506_s30, 0  ;;  %s5524_s24 = scalar_lea.sflag [#allocation7], %s4614_s11 }
 0x12a   : > { %s4103_s0 = scalar_lea.hbm %s4714_s7, 4096  ;;  %s4108_s4 = scalar_lea.hbm %s5510_s12, 8192 }
 0x12b   : > { %3555 = dma.hbm_to_vmem [thread:$0]  (!%p5523_p13), %s4800_s3, 16, %s747_s6, %s5524_s24  }
 0x12c   : > { %p4104_p8 = scmp.ne.s32.totalorder %s4714_s7, %s4103_s0  ;;  %p4109_p9 = scmp.lt.u32.totalorder %s4714_s7, %s5510_s12 }
 0x12d   : > { %p4110_p0 = scmp.lt.u32.totalorder %s4108_s4, %s4103_s0  ;;  %p4112_p11 = scmp.lt.u32.totalorder %s4103_s0, %s4714_s7 }
 0x12e   : > { %p4106_p2 = pnand %p4104_p8, %p5522_p1 }
 0x12f   : > { %p4111_p6 = por %p4110_p0, %p4109_p9 }
 0x130   : > { %p4107_p7 = pneg %p4106_p2 }
 0x131   : > { %p4113_p5 = por %p4112_p11, %p4111_p6 }
 0x133   : > { %p4114_p12 = pnand %p4113_p5, %p4107_p7 }
 0x135   : > { %4117 = shalt.err (!%p4114_p12)
}
 0x136   : > { %s4118_s3 = scalar_lea.vmem %s4721_s21, 4096  ;;  %s4351_s6 = smov [#allocation11]  }
 0x137   : > { %p4119_p4 = scmp.ne.s32.totalorder %s4721_s21, %s4118_s3  ;;  %s4123_s8 = sshll.u32 %s4351_s6, 4  ;;  %s4124_s8 = int_to_ptr.vmem [resolvable:$false] %s4123_s8 }
 0x138   : > { %s4125_s23 = scalar_lea.vmem %s4124_s8, 8192  ;;  %p4126_p8 = scmp.lt.s32.totalorder %s4721_s21, %s4124_s8 }
 0x139   : > { %p4121_p3 = pnand %p4119_p4, %p5522_p1  ;;  %p4127_p2 = scmp.lt.s32.totalorder %s4125_s23, %s4118_s3 }
 0x13b   : > { %p4122_p10 = pneg %p4121_p3  ;;  %p4128_p9 = por %p4127_p2, %p4126_p8 }
 0x13d   : > { %p4129_p0 = pnand %p4128_p9, %p4122_p10 }
 0x13f   : > { %4132 = shalt.err (!%p4129_p0)
}
 0x140   : > { %s5525_s17 = scalar_lea.sflag [#allocation10], %s4614_s11  ;;  %s5526_s15 = sld [smem:[#allocation65_spill]] }
 0x141   : > { %3561 = dma.hbm_to_vmem [thread:$0]  (!%p5523_p13), %s4714_s7, 4096, %s4721_s21, %s5525_s17, %s5519_s26, %s5519_s26, %s5518_s5  }
 0x142   : > { %s828_s14 = scalar_lea.vmem [#allocation14], %s4617_s27 }
 0x143   : > { %s835_s24 = sshll.u32 %s828_s14, 4  ;;  %s836_s24 = int_to_ptr.vmem [resolvable:$true] %s835_s24 }
 0x146   : > { %s4870_s10 = scalar_lea.hbm %s5526_s15, %s4719_s28  ;;  %s4138_s21 = scalar_lea.hbm %s5526_s15, 32 }
 0x147   : > { %s4133_s0 = scalar_lea.hbm %s4870_s10, 16  ;;  %p4139_p5 = scmp.lt.u32.totalorder %s4870_s10, %s5526_s15 }
 0x148   : > { %p4134_p7 = scmp.ne.s32.totalorder %s4870_s10, %s4133_s0  ;;  %p4140_p12 = scmp.lt.u32.totalorder %s4138_s21, %s4133_s0 }
 0x149   : > { %p4142_p3 = scmp.lt.u32.totalorder %s4133_s0, %s4870_s10 }
 0x14a   : > { %p4136_p6 = pnand %p4134_p7, %p5522_p1  ;;  %p4141_p4 = por %p4140_p12, %p4139_p5 }
 0x14c   : > { %p4137_p11 = pneg %p4136_p6  ;;  %p4143_p10 = por %p4142_p3, %p4141_p4 }
 0x14e   : > { %p4144_p8 = pnand %p4143_p10, %p4137_p11 }
 0x150   : > { %4147 = shalt.err (!%p4144_p8)
}
 0x151   : > { %s4148_s27 = scalar_lea.vmem %s836_s24, 16  ;;  %s4352_s28 = smov [#allocation14]  }
 0x152   : > { %p4149_p2 = scmp.ne.s32.totalorder %s836_s24, %s4148_s27  ;;  %s4153_s26 = sshll.u32 %s4352_s28, 4  ;;  %s4154_s26 = int_to_ptr.vmem [resolvable:$false] %s4153_s26 }
 0x153   : > { %s4155_s4 = scalar_lea.vmem %s4154_s26, 32  ;;  %p4156_p7 = scmp.lt.s32.totalorder %s836_s24, %s4154_s26 }
 0x154   : > { %p4151_p9 = pnand %p4149_p2, %p5522_p1  ;;  %p4157_p6 = scmp.lt.s32.totalorder %s4155_s4, %s4148_s27 }
 0x156   : > { %p4152_p0 = pneg %p4151_p9  ;;  %p4158_p13 = por %p4157_p6, %p4156_p7 }
 0x158   : > { %p4159_p5 = pnand %p4158_p13, %p4152_p0 }
 0x15a   : > { %4162 = shalt.err (!%p4159_p5)
}
 0x15b   : > { %p5527_p12 = scmp.ne.s32.totalorder %s5506_s30, 0  ;;  %s5528_s20 = scalar_lea.sflag [#allocation13], %s4614_s11 }
 0x15c   : > { %p5529_p11 = scmp.ne.s32.totalorder %s5495_s1, 0 }
 0x15d   : > { %3567 = dma.hbm_to_vmem [thread:$0]  (!%p5527_p12), %s4870_s10, 16, %s836_s24, %s5528_s20  }
 0x15e   : > { %844 = sbr.rel (%p5529_p11) target bundleno = 4207 (0x106f), region = 100 }
 0x165   : > { %s5530_s25 = sld [smem:[#allocation41_spill]] }
 0x16b   : > { %p5531_p1 = scmp.eq.s32.totalorder %s5530_s25, 0 }
 0x16d   : > { %4264 = dma.done.wait (%p5531_p1), [#allocation4], 16   ;;  %p5532_p4 = pmov %p5531_p1 }
 0x16e   : > { %s5533_s29 = sld [smem:[#allocation34_spill]]  ;;  %s5534_s3 = sld [smem:[#allocation42_spill]] }
 0x16f   : > { %4266 = vsyncadd (%p5532_p4), [#allocation4], 4294967280  ;;  %s850_s6 = sand.u32 1, %s5530_s25  }
 0x170   : > { %s851_s11 = scalar_lea.sflag [#allocation7], %s850_s6 }
 0x174   : > { %s4900_s8 = sand.u32 1, %s5533_s29   ;;  %p5535_p13 = scmp.ne.s32.totalorder %s5534_s3, 0 }
 0x175   : > { %s3161_s30 = sshll.u32 %s4900_s8, 6 }
 0x176   : > { %s4903_s23 = scalar_lea.vmem [#allocation6], %s3161_s30 }
 0x177   : > { %4268 = dma.done.wait (%p5535_p13), %s851_s11, 1040  }
 0x178   : > { %4270 = vsyncadd (%p5535_p13), %s851_s11, 4294966256  ;;  %s3162_s1 = sshll.u32 %s4900_s8, 8  ;;  %s868_s2 = scalar_lea.sflag [#allocation10], %s850_s6 }
 0x179   : > { %s4911_s16 = scalar_lea.vmem [#allocation9], %s3162_s1 }
 0x17a   : > { %4272 = dma.done.wait (%p5535_p13), %s868_s2, 8192  }
 0x17b   : > { %4274 = vsyncadd (%p5535_p13), %s868_s2, 4294959104  ;;  %s4917_s10 = scalar_lea.vmem [#allocation11], %s3162_s1  ;;  %s886_s14 = scalar_lea.sflag [#allocation13], %s850_s6 }
 0x17c   : > { %5536 = sst [smem:[#allocation49_spill]] %s4917_s10 }
 0x17d   : > { %4276 = dma.done.wait (%p5535_p13), %s886_s14, 32  }
 0x17e   : > { %4278 = vsyncadd (%p5535_p13), %s886_s14, 4294967264  ;;  %p5537_p3 = pmov %p5531_p1 }
 0x17f   : > { %p5538_p10 = pmov %p5531_p1 }
 0x180   : > { %4280 = dma.done.wait (%p5537_p3), [#allocation16], 1040  }
 0x181   : > { %4282 = vsyncadd (%p5538_p10), [#allocation16], 4294966256  ;;  %p5539_p8 = pmov %p5531_p1 }
 0x182   : > { %p5540_p2 = pmov %p5531_p1 }
 0x183   : > { %4284 = dma.done.wait (%p5539_p8), [#allocation19], 16  }
 0x184   : > { %4286 = vsyncadd (%p5540_p2), [#allocation19], 4294967280  ;;  %s5541_s22 = sld [smem:[#allocation32_spill]]  ;;  %s5542_s13 = sld [smem:[#allocation37_spill]] }
 0x185   : > { %s5543_s21 = sld [smem:[#allocation36_spill]]  ;;  %s5545_s6 = sld [smem:[#allocation50_spill]] }
 0x186   : > { %s5547_s9 = sld [smem:[#allocation54_spill]]  ;;  %s5548_s19 = sld [smem:[#allocation58_spill]] }
 0x187   : > { %s5549_s25 = sld [smem:[#allocation55_spill]]  ;;  %s5550_s10 = sld [smem:[#allocation61_spill]] }
 0x188   : > { %s5551_s17 = sld [smem:[#allocation63_spill]] }
 0x18a   : > { %s4934_s7 = sand.u32 1, %s5541_s22   ;;  %p1023_p9 = scmp.lt.s32.totalorder %s5542_s13, 1 }
 0x18b   : > { %s3167_s5 = sshll.u32 %s4934_s7, 4  ;;  %p1031_p0 = scmp.lt.s32.totalorder %s5543_s21, 1 }
 0x18c   : > { %s5591_s13 = smov (!%p1023_p9, %s5542_s13), 1  ;;  %s5546_s22 = sld [smem:[#allocation57_spill]] }
 0x18d   : > { %s4943_s27 = scalar_select %p1031_p0, %s5543_s21, 1 }
 0x18e   : > { %s3308_s28 = sshll.u32 %s5591_s13, 4  ;;  %s4983_s24 = scalar_lea.vmem [#allocation20], %s3167_s5 }
 0x18f   : > { %s1027_s30 = scalar_lea.vmem %s5545_s6, %s3308_s28  ;;  %s3502_s11 = smul.u32 192, %s4943_s27 }
 0x190   : > { %s3503_s1 = smul.u32 3, %s4943_s27  ;;  %s1045_s26 = scalar_lea.vmem %s5548_s19, %s4943_s27 }
 0x191   : > { %s4962_s12 = scalar_lea.vmem %s5547_s9, %s3502_s11  ;;  %s3171_s28 = sshll.u32 %s4943_s27, 2 }
 0x192   : > { %s1042_s0 = scalar_lea.vmem %s5546_s22, %s4943_s27  ;;  %s4971_s29 = scalar_lea.vmem %s5549_s25, %s3503_s1 }
 0x193   : > { %s4977_s2 = scalar_lea.vmem %s5550_s10, %s3171_s28  ;;  %s1052_s9 = scalar_lea.vmem %s5551_s17, %s4943_s27 }
 0x194   : > { %s1022_s11 = scalar_lea.vmem [#allocation21], %s4934_s7  ;;  %p3172_p7 = scmp.ne.s32.totalorder %s5543_s21, 0 }
 0x195   : > { %v1058_v0 = vld [vmem:[%s1027_s30] sm:$0xff] (!%p3172_p7)  ;;  %v1059_v1 = vld [vmem:[%s1027_s30 + $0x8] sm:$0xff] (!%p3172_p7)  ;;  %s5552_s19 = sld [smem:[#allocation52_spill]] (!%p3172_p7) }
 0x196   : > { %1057 = sbr.rel (%p3172_p7) target bundleno = 722 (0x2d2), region = 144  ;;  %1062 = vadd.xlane.f32.xlu0 (!%p3172_p7), %v1058_v0  ;;  %v3174_v19 = vld [vmem:[#allocation3] ss:$0 sm:$0xff] (!%p3172_p7) }
 0x19a   : > { %1064 = vadd.xlane.f32.xlu0 (!%p3172_p7), %v1059_v1 }
 0x19b   : > { %v3173_v17 = vld [vmem:[%s5552_s19] ss:$0 sm:$0xff] (!%p3172_p7) }
 0x223   : > { %v1063_v2 = vpop.xlane.xlu0 %1062 }
 0x224   : > { %v1067_v3 = vmul.f32 0.0078125, %v1063_v2 }
 0x226   : > { %v1069_v4 = vsub.f32 %v1058_v0, %v1067_v3 }
 0x227   : > { %v1065_v5 = vpop.xlane.xlu0 %1064 }
 0x228   : > { %v1068_v6 = vmul.f32 0.0078125, %v1065_v5  ;;  %v1071_v7 = vmul.f32 %v1069_v4, %v1069_v4 }
 0x22a   : > { %v1070_v8 = vsub.f32 %v1059_v1, %v1068_v6  ;;  %1073 = vadd.xlane.f32.xlu1 %v1071_v7 }
 0x22c   : > { %v1072_v9 = vmul.f32 %v1070_v8, %v1070_v8 }
 0x22e   : > { %1075 = vadd.xlane.f32.xlu1 %v1072_v9 }
 0x2b7   : > { %v1074_v10 = vpop.xlane.xlu1 %1073 }
 0x2b8   : > { %v1077_v11 = vmul.f32 0.0078125, %v1074_v10 }
 0x2ba   : > { %v1079_v12 = vadd.f32 1e-12, %v1077_v11 }
 0x2bb   : > { %v1076_v13 = vpop.xlane.xlu1 %1075 }
 0x2bc   : > { %3689 = vrsqrt.f32 %v1079_v12  ;;  %v1078_v14 = vmul.f32 0.0078125, %v1076_v13 }
 0x2be   : > { %v1080_v15 = vadd.f32 1e-12, %v1078_v14 }
 0x2c0   : > { %3691 = vrsqrt.f32 %v1080_v15 }
 0x2c6   : > { %v3690_v16 = vpop.eup %3689 }
 0x2c7   : > { %v1083_v18 = vmul.f32 %v3690_v16, %v1069_v4 }
 0x2c9   : > { %v1091_v20 = vmul.f32 %v3173_v17, %v1083_v18 }
 0x2ca   : > { %v3692_v21 = vpop.eup %3691 }
 0x2cb   : > { %v1099_v22 = vadd.f32 %v3174_v19, %v1091_v20  ;;  %v1084_v23 = vmul.f32 %v3692_v21, %v1070_v8 }
 0x2cd   : > { %1101 = vst [vmem:[%s4983_s24] sm:$0xff] %v1099_v22  ;;  %v1092_v24 = vmul.f32 %v3173_v17, %v1084_v23 }
 0x2cf   : > { %v1100_v25 = vadd.f32 %v3174_v19, %v1092_v24 }
 0x2d1   : > { %1102 = vst [vmem:[%s4983_s24 + $0x8] sm:$0xff] %v1100_v25 }
 0x2d2 PF: > { %v3693_v26 = vld [vmem:[%s4962_s12 + $0x4] ss:$12 sps:$4 sm:$0xff]   ;;  %v3695_v27 = vld [vmem:[%s4962_s12] ss:$12 sps:$4 sm:$0xff]   ;;  %v4353_v28 = vmov 0   ;;  %v4354_v29 = vmov 0.0   ;;  %v1140_v55 = vlaneseq }
 0x2d3   : > { %1315 = vmatprep.mubr.bf16.mxu0 %v4353_v28  ;;  %3398 = vmatprep.subr.bf16.mxu1 %v4354_v29  ;;  %v3696_v30 = vld [vmem:[%s4962_s12 + $0x1c] ss:$12 sps:$4 sm:$0xff]   ;;  %v3698_v31 = vld [vmem:[%s4962_s12 + $0x18] ss:$12 sps:$4 sm:$0xff]   ;;  %v3699_v32 = vld [vmem:[%s4962_s12 + $0x34] ss:$12 sps:$4 sm:$0xff]  }
 0x2d4   : > { %1283 = vmatprep.subr.bf16.mxu0 %v3693_v26  ;;  %v3701_v33 = vld [vmem:[%s4962_s12 + $0x30] ss:$12 sps:$4 sm:$0xff]   ;;  %v3702_v34 = vld [vmem:[%s4962_s12 + $0x4c] ss:$12 sps:$4 sm:$0xff]   ;;  %v3704_v35 = vld [vmem:[%s4962_s12 + $0x48] ss:$12 sps:$4 sm:$0xff]  }
 0x2d5   : > { %1284 = vmatpush1.bf16.msra.mxu0 %v3695_v27  ;;  %v3705_v36 = vld [vmem:[%s4962_s12 + $0x64] ss:$12 sps:$4 sm:$0xff]   ;;  %v3717_v37 = vld [vmem:[%s4962_s12 + $0x8] ss:$12 sps:$4 sm:$0xff]   ;;  %v3718_v38 = vld [vmem:[%s4962_s12 + $0x20] ss:$12 sps:$4 sm:$0xff]  }
 0x2d6   : > { %1285 = vmatprep.subr.bf16.mxu0 %v3696_v30  ;;  %3399 = vmatpush3.bf16.msra.mxu1 %v3717_v37  ;;  %v3707_v39 = vld [vmem:[%s4962_s12 + $0x60] ss:$12 sps:$4 sm:$0xff]   ;;  %v3708_v40 = vld [vmem:[%s4962_s12 + $0x7c] ss:$12 sps:$4 sm:$0xff]   ;;  %v3710_v41 = vld [vmem:[%s4962_s12 + $0x78] ss:$12 sps:$4 sm:$0xff]  }
 0x2d7   : > { %3400 = vmatprep.subr.bf16.mxu1 %v4354_v29  ;;  %v3711_v42 = vld [vmem:[%s4962_s12 + $0x94] ss:$12 sps:$4 sm:$0xff]   ;;  %v3719_v43 = vld [vmem:[%s4962_s12 + $0x38] ss:$12 sps:$4 sm:$0xff]   ;;  %v3720_v44 = vld [vmem:[%s4962_s12 + $0x50] ss:$12 sps:$4 sm:$0xff]  }
 0x2d8   : > { %v3713_v45 = vld [vmem:[%s4962_s12 + $0x90] ss:$12 sps:$4 sm:$0xff]   ;;  %v3714_v46 = vld [vmem:[%s4962_s12 + $0xac] ss:$12 sps:$4 sm:$0xff]   ;;  %v3721_v47 = vld [vmem:[%s4962_s12 + $0x68] ss:$12 sps:$4 sm:$0xff]  }
 0x2d9   : > { %1286 = vmatpush1.bf16.msra.mxu0 %v3698_v31  ;;  %v3716_v48 = vld [vmem:[%s4962_s12 + $0xa8] ss:$12 sps:$4 sm:$0xff]   ;;  %v5022_v50 = vld [vmem:[%s4983_s24 + $0x8] sm:$0xff]  ;;  %v3723_v53 = vld [vmem:[%s4962_s12 + $0x98] ss:$12 sps:$4 sm:$0xff]   ;;  %vm4355_vm0 = vmmov 0  }
 0x2da   : > { %1287 = vmatprep.subr.bf16.mxu0 %v3699_v32  ;;  %3401 = vmatpush3.bf16.msra.mxu1 %v3718_v38  ;;  %v5019_v49 = vld [vmem:[%s4983_s24] sm:$0xff]  ;;  %v3722_v51 = vld [vmem:[%s4962_s12 + $0x80] ss:$12 sps:$4 sm:$0xff]   ;;  %v3724_v54 = vld [vmem:[%s4962_s12 + $0xb0] ss:$12 sps:$4 sm:$0xff]   ;;  %v5041_v56 = vshrl.u32 %v1140_v55, 7 }
 0x2db   : > { %3402 = vmatprep.subr.bf16.mxu1 %v4354_v29  ;;  %v1105_v52 = vpack.c.bf16 %v5022_v50, %v5019_v49  ;;  %3414 = vmatprep.mubr.msk.bf16.mxu1 %vm4355_vm0, %v4354_v29  ;;  %v1138_v58 = vld [vmem:[%s4971_s29] sm:$0x7]  ;;  %vm1371_vm1 = vcmask 523264   ;;  %s5553_s21 = sld [smem:[#allocation51_spill]]  ;;  %vm1429_vm2 = vcmask 130048   ;;  %s4356_s25 = smov 64  }
 0x2dc   : > { %v1142_v57 = vsub.s32 0, %v5041_v56  ;;  %v1146_v59 = vsub.s32 1, %v5041_v56  ;;  %v1150_v9 = vsub.s32 2, %v5041_v56  ;;  %vm1632_vm3 = vcmask 1048064   ;;  %s5558_s20 = scalar_lea.vmem [#allocation8], %s4900_s8  ;;  %s5560_s27 = scalar_lea.vmem [#allocation12], %s4900_s8 }
 0x2dd   : > { %1288 = vmatpush1.bf16.msra.mxu0 %v3701_v33  ;;  %s5561_s3 = scalar_lea.vmem [#allocation14], %s4900_s8  ;;  %s5562_s6 = sld [smem:[#allocation36_spill]] }
 0x2de   : > { %1289 = vmatprep.subr.bf16.mxu0 %v3702_v34  ;;  %3403 = vmatpush3.bf16.msra.mxu1 %v3719_v43  ;;  %v1143_v60 = vrot.slane %v1138_v58, %v1142_v57  ;;  %v1147_v62 = vrot.slane %v1138_v58, %v1146_v59  ;;  %v1151_v10 = vrot.slane %v1138_v58, %v1150_v9 }
 0x2df   : > { %3404 = vmatprep.subr.bf16.mxu1 %v4354_v29 }
 0x2e1   : > { %1290 = vmatpush1.bf16.msra.mxu0 %v3704_v35  ;;  %s5554_s5 = scalar_lea.vmem %s5553_s21, %s5591_s13 }
 0x2e2   : > { %1291 = vmatprep.subr.bf16.mxu0 %v3705_v36  ;;  %3405 = vmatpush3.bf16.msra.mxu1 %v3720_v44  ;;  %v3200_v19 = vld [vmem:[%s5554_s5] ss:$0 sm:$0xff] }
 0x2e3   : > { %3406 = vmatprep.subr.bf16.mxu1 %v4354_v29  ;;  %p3282_p6 = scmp.ne.s32.totalorder %s5562_s6, 1 }
 0x2e4   : > { %s5563_s22 = sld [smem:[#allocation66_spill]] (!%p3282_p6)  ;;  %vm4358_vm4 = vmmov (!%p3282_p6), 0  }
 0x2e5   : > { %1292 = vmatpush1.bf16.msra.mxu0 %v3707_v39 }
 0x2e6   : > { %1293 = vmatprep.subr.bf16.mxu0 %v3708_v40  ;;  %3407 = vmatpush3.bf16.msra.mxu1 %v3721_v47 }
 0x2e7   : > { %3408 = vmatprep.subr.bf16.mxu1 %v4354_v29 }
 0x2e9   : > { %1294 = vmatpush1.bf16.msra.mxu0 %v3710_v41 }
 0x2ea   : > { %1295 = vmatprep.subr.bf16.mxu0 %v3711_v42  ;;  %3409 = vmatpush3.bf16.msra.mxu1 %v3722_v51 }
 0x2eb   : > { %3410 = vmatprep.subr.bf16.mxu1 %v4354_v29 }
 0x2ed   : > { %1296 = vmatpush1.bf16.msra.mxu0 %v3713_v45 }
 0x2ee   : > { %1297 = vmatprep.subr.bf16.mxu0 %v3714_v46  ;;  %3411 = vmatpush3.bf16.msra.mxu1 %v3723_v53 }
 0x2ef   : > { %3412 = vmatprep.subr.bf16.mxu1 %v4354_v29 }
 0x2f1   : > { %1298 = vmatpush1.bf16.msra.mxu0 %v3716_v48 }
 0x2f2   : > { %3442 = vmatprep.subr.bf16.mxu0 %v4354_v29  ;;  %3413 = vmatpush3.bf16.msra.mxu1 %v3724_v54 }
 0x2f3   : > { %3418 = vmatprep.subr.bf16.mxu1 %v4354_v29 }
 0x2f4   : > { %1316 = vmatmul.mubr.bf16.vlgmr.msra.gmra.mrb[0].mxu0 %v1105_v52 }
 0x2f5   : > { %3458 = vmatprep.mubr.msk.bf16.mxu0 %vm4355_vm0, %v4354_v29  ;;  %3415 = vmatmul.mubr.bf16.vlgmr.msra.gmra.mrb[0].mxu1 %v1105_v52 }
 0x2f6   : > { %3420 = vmatprep.mubr.msk.bf16.mxu1 %vm4355_vm0, %v4354_v29 }
 0x3c7   : > { %v1317_v61 = vpop.f32.mrb[0].mxu0 }
 0x3c8   : > { %v1319_v63 = vpop.f32.mrb[1].mxu0  ;;  %v1318_v1 = vadd.f32 %v1317_v61, %v1143_v60  ;;  %v1360_v11 = vpop.f32.mrb[0].mxu1 }
 0x3c9   : > { %v1321_v0 = vpop.f32.mrb[2].mxu0  ;;  %v1320_v4 = vadd.f32 %v1319_v63, %v1147_v62  ;;  %v1361_v12 = vadd.f32 %v1360_v11, %v1151_v10  ;;  %v3416_v13 = vpop.f32.mrb[1].mxu1 }
 0x3ca   : > { %v1322_v2 = vadd.f32 %v1321_v0, %v1143_v60  ;;  %v1323_v3 = vpop.f32.mrb[3].mxu0  ;;  %v1363_v14 = vpop.f32.mrb[2].mxu1 }
 0x3cb   : > { %v1324_v5 = vadd.f32 %v1323_v3, %v1147_v62  ;;  %v1364_v15 = vadd.f32 %v1363_v14, %v1151_v10  ;;  %v3417_v16 = vpop.f32.mrb[3].mxu1 }
 0x3cc   : > { %v1368_v6 = vpack.c.bf16 %v1322_v2, %v1318_v1 }
 0x3cd   : > { %v1369_v7 = vpack.c.bf16 %v1324_v5, %v1320_v4  ;;  %v5058_v17 = vpack.c.bf16 %v1364_v15, %v1361_v12 }
 0x3cf   : > { %v1376_v8 = vsel %vm1371_vm1, %v1369_v7, 0 }
 0x3d0   : > { %3419 = vmatpush3.bf16.xpose.msra.mxu1 %v1376_v8 }
 0x3d1   : > { %3424 = vmatprep.subr.bf16.mxu1 %v4354_v29 }
 0x3d7   : > { %3421 = vmatmul.mubr.msk.bf16.vlgmr.msra.gmra.mrb[4].mxu1 %vm1371_vm1, %v1368_v6 }
 0x3d8   : > { %3426 = vmatprep.mubr.msk.bf16.mxu1 %vm4355_vm0, %v4354_v29  ;;  %3425 = vmatpush3.bf16.msra.mxu1 %v5058_v17 }
 0x3d9   : > { %3430 = vmatprep.subr.bf16.mxu1 %v4354_v29 }
 0x4aa   : > { %v1412_v18 = vpop.f32.mrb[4].mxu1 }
 0x4ab   : > { %v1419_v20 = vmul.f32 0.125, %v1412_v18  ;;  %v3422_v21 = vpop.f32.mrb[5].mxu1 }
 0x4ac   : > { %v1415_v22 = vpop.f32.mrb[6].mxu1 }
 0x4ad   : > { %v1420_v23 = vmul.f32 0.125, %v1415_v22  ;;  %v3423_v24 = vpop.f32.mrb[7].mxu1  ;;  %v1427_v25 = vadd.f32 %v3200_v19, %v1419_v20 }
 0x4af   : > { %v1430_v26 = vsel %vm1429_vm2, %v1427_v25, -inf  ;;  %v1428_v27 = vadd.f32 %v3200_v19, %v1420_v23 }
 0x4b0   : > { %1431 = vmax.xlane.f32.xlu0 %v1430_v26 }
 0x4b1   : > { %v1433_v30 = vsel %vm1429_vm2, %v1428_v27, -inf }
 0x4b4   : > { %1434 = vmax.xlane.f32.xlu0 %v1433_v30  ;;  %v3727_v30 = vld [vmem:[%s4903_s23 + $0x10] sm:$0xff]  }
 0x4ca   : > { %1503 = vrot.lane.b32.xlu0 %v1369_v7, %s4356_s25 }
 0x53d   : > { %v1432_v31 = vpop.xlane.xlu0 %1431 }
 0x53e   : > { %v1436_v32 = vsub.f32 %v1427_v25, %v1432_v31  ;;  %v3728_v31 = vld [vmem:[%s4903_s23 + $0x18] sm:$0xff]  }
 0x540   : > { %v1438_v33 = vmul.f32 1.442695, %v1436_v32  ;;  %v3729_v32 = vld [vmem:[%s4903_s23 + $0x20] sm:$0xff]  }
 0x541   : > { %v1435_v34 = vpop.xlane.xlu0 %1434 }
 0x542   : > { %3813 = vpow2.f32 %v1438_v33  ;;  %v1437_v35 = vsub.f32 %v1428_v27, %v1435_v34  ;;  %v3726_v27 = vld [vmem:[%s4903_s23 + $0x8] sm:$0xff]   ;;  %v3731_v34 = vld [vmem:[%s4903_s23 + $0x30] sm:$0xff]  }
 0x543   : > { %v3730_v33 = vld [vmem:[%s4903_s23 + $0x28] sm:$0xff]  }
 0x544   : > { %v1440_v36 = vmul.f32 1.442695, %v1437_v35  ;;  %v3732_v35 = vld [vmem:[%s4903_s23 + $0x38] sm:$0xff]  }
 0x545   : > { %v1504_v47 = vpop.permute.xlu0 %1503 }
 0x546   : > { %3815 = vpow2.f32 %v1440_v36  ;;  %v1509_v51 = vsel %vm1371_vm1, %v1504_v47, 0 }
 0x54c   : > { %v3814_v37 = vpop.eup %3813 }
 0x54d   : > { %v1442_v38 = vsel %vm1429_vm2, %v3814_v37, 0.0 }
 0x54e   : > { %1443 = vadd.xlane.f32.xlu1 %v1442_v38 }
 0x550   : > { %v3816_v39 = vpop.eup %3815 }
 0x551   : > { %v1445_v40 = vsel %vm1429_vm2, %v3816_v39, 0.0 }
 0x552   : > { %1446 = vadd.xlane.f32.xlu1 %v1445_v40 }
 0x563   : > { %1500 = vrot.lane.b32.xlu1 %v1368_v6, %s4356_s25 }
 0x5db   : > { %v1444_v41 = vpop.xlane.xlu1 %1443 }
 0x5dc   : > { %3817 = vrcp.f32 %v1444_v41 }
 0x5df   : > { %v1447_v42 = vpop.xlane.xlu1 %1446 }
 0x5e0   : > { %3819 = vrcp.f32 %v1447_v42 }
 0x5e3   : > { %v1501_v52 = vpop.permute.xlu1 %1500 }
 0x5e6   : > { %v3818_v43 = vpop.eup %3817 }
 0x5e7   : > { %v1450_v45 = vmul.f32 %v3818_v43, %v3814_v37 }
 0x5ea   : > { %v3820_v44 = vpop.eup %3819 }
 0x5eb   : > { %v1451_v46 = vmul.f32 %v3820_v44, %v3816_v39 }
 0x5ed   : > { %v1452_v48 = vpack.c.bf16 %v1451_v46, %v1450_v45 }
 0x5ef   : > { %3427 = vmatmul.mubr.msk.bf16.vlgmr.msra.gmra.mrb[8].mxu1 %vm1429_vm2, %v1452_v48 }
 0x5f0   : > { %3431 = vmatpush3.bf16.xpose.msra.mxu1 %v1509_v51  ;;  %3432 = vmatprep.mubr.msk.bf16.mxu1 %vm4355_vm0, %v4354_v29 }
 0x5f1   : > { %3436 = vmatprep.subr.bf16.mxu1 %v4354_v29 }
 0x5f7   : > { %3433 = vmatmul.mubr.msk.bf16.vlgmr.msra.gmra.mrb[12].mxu1 %vm1371_vm1, %v1501_v52  ;;  %v3733_v52 = vld [vmem:[%s4911_s16] ss:$16 sps:$4 sm:$0xff]  }
 0x5f8   : > { %3438 = vmatprep.mubr.msk.bf16.mxu1 %vm4355_vm0, %v4354_v29 }
 0x6c2   : > { %v1490_v53 = vpop.f32.mrb[8].mxu1 }
 0x6c3   : > { %v3428_v54 = vpop.f32.mrb[9].mxu1 }
 0x6c4   : > { %v1493_v55 = vpop.f32.mrb[10].mxu1  ;;  %v3736_v54 = vld [vmem:[%s4911_s16 + $0x8] ss:$16 sps:$4 sm:$0xff]  }
 0x6c5   : > { %v1497_v58 = vpack.c.bf16 %v1493_v55, %v1490_v53  ;;  %v3429_v60 = vpop.f32.mrb[11].mxu1  ;;  %v3735_v53 = vld [vmem:[%s4911_s16 + $0x4] ss:$16 sps:$4 sm:$0xff]   ;;  %v3738_v55 = vld [vmem:[%s4911_s16 + $0xc] ss:$16 sps:$4 sm:$0xff]  }
 0x6c6   : > { %v3744_v60 = vld [vmem:[%s4911_s16 + $0x2c] ss:$16 sps:$4 sm:$0xff]  }
 0x6c7   : > { %1498 = vst.msk [vmem:[#allocation2] sm:$0xff] %vm1371_vm1, %v1497_v58  ;;  %v3741_v58 = vld [vmem:[%s4911_s16 + $0x24] ss:$16 sps:$4 sm:$0xff]  }
 0x6ca   : > { %v1545_v61 = vpop.f32.mrb[12].mxu1 }
 0x6cb   : > { %v1552_v62 = vmul.f32 0.125, %v1545_v61  ;;  %v3434_v63 = vpop.f32.mrb[13].mxu1  ;;  %v3739_v61 = vld [vmem:[%s4911_s16 + $0x20] ss:$16 sps:$4 sm:$0xff]  }
 0x6cc   : > { %v1548_v0 = vpop.f32.mrb[14].mxu1 }
 0x6cd   : > { %v1553_v1 = vmul.f32 0.125, %v1548_v0  ;;  %v3435_v2 = vpop.f32.mrb[15].mxu1  ;;  %v1554_v3 = vadd.f32 %v3200_v19, %v1552_v62 }
 0x6cf   : > { %v1556_v4 = vsel %vm1429_vm2, %v1554_v3, -inf  ;;  %v1555_v5 = vadd.f32 %v3200_v19, %v1553_v1 }
 0x6d0   : > { %1557 = vmax.xlane.f32.xlu1 %v1556_v4 }
 0x6d1   : > { %v1559_v6 = vsel %vm1429_vm2, %v1555_v5, -inf }
 0x6d2   : > { %1560 = vmax.xlane.f32.xlu0 %v1559_v6  ;;  %v3750_v6 = vld [vmem:[%s4911_s16 + $0x4c] ss:$16 sps:$4 sm:$0xff]  }
 0x75d   : > { %v1558_v7 = vpop.xlane.xlu1 %1557 }
 0x75e   : > { %v1562_v8 = vsub.f32 %v1554_v3, %v1558_v7  ;;  %v3745_v7 = vld [vmem:[%s4911_s16 + $0x40] ss:$16 sps:$4 sm:$0xff]  }
 0x75f   : > { %v1561_v10 = vpop.xlane.xlu0 %1560 }
 0x760   : > { %v1564_v11 = vmul.f32 1.442695, %v1562_v8  ;;  %v1563_v12 = vsub.f32 %v1555_v5, %v1561_v10  ;;  %v3747_v5 = vld [vmem:[%s4911_s16 + $0x44] ss:$16 sps:$4 sm:$0xff]   ;;  %v3748_v8 = vld [vmem:[%s4911_s16 + $0x48] ss:$16 sps:$4 sm:$0xff]  }
 0x761   : > { %v3753_v10 = vld [vmem:[%s4911_s16 + $0x64] ss:$16 sps:$4 sm:$0xff]  }
 0x762   : > { %3821 = vpow2.f32 %v1564_v11  ;;  %v1566_v13 = vmul.f32 1.442695, %v1563_v12  ;;  %v3756_v11 = vld [vmem:[%s4911_s16 + $0x6c] ss:$16 sps:$4 sm:$0xff]   ;;  %v3751_v12 = vld [vmem:[%s4911_s16 + $0x60] ss:$16 sps:$4 sm:$0xff]  }
 0x764   : > { %3823 = vpow2.f32 %v1566_v13  ;;  %v3754_v13 = vld [vmem:[%s4911_s16 + $0x68] ss:$16 sps:$4 sm:$0xff]  }
 0x76c   : > { %v3822_v14 = vpop.eup %3821 }
 0x76d   : > { %v1568_v15 = vsel %vm1429_vm2, %v3822_v14, 0.0 }
 0x76e   : > { %v3824_v16 = vpop.eup %3823  ;;  %1569 = vadd.xlane.f32.xlu0 %v1568_v15  ;;  %v3762_v15 = vld [vmem:[%s4911_s16 + $0x8c] ss:$16 sps:$4 sm:$0xff]  }
 0x76f   : > { %v1571_v18 = vsel %vm1429_vm2, %v3824_v16, 0.0 }
 0x770   : > { %1572 = vadd.xlane.f32.xlu1 %v1571_v18  ;;  %v3760_v18 = vld [vmem:[%s4911_s16 + $0x88] ss:$16 sps:$4 sm:$0xff]  }
 0x784   : > { %1580 = vrot.lane.b32.xlu0 %v5058_v17, %s4356_s25  ;;  %v3725_v17 = vld [vmem:[%s4903_s23] sm:$0xff]  }
 0x785   : > { %3443 = vmatpush3.bf16.msra.mxu0 %v3725_v17  ;;  %v3777_v17 = vld [vmem:[%s4911_s16 + $0xe4] ss:$16 sps:$4 sm:$0xff]  }
 0x786   : > { %3444 = vmatprep.subr.bf16.mxu0 %v4354_v29 }
 0x789   : > { %3445 = vmatpush3.bf16.msra.mxu0 %v3726_v27  ;;  %v3780_v27 = vld [vmem:[%s4911_s16 + $0xec] ss:$16 sps:$4 sm:$0xff]  }
 0x78a   : > { %3446 = vmatprep.subr.bf16.mxu0 %v4354_v29 }
 0x78d   : > { %3447 = vmatpush3.bf16.msra.mxu0 %v3727_v30  ;;  %v3775_v30 = vld [vmem:[%s4911_s16 + $0xe0] ss:$16 sps:$4 sm:$0xff]  }
 0x78e   : > { %3448 = vmatprep.subr.bf16.mxu0 %v4354_v29 }
 0x791   : > { %3449 = vmatpush3.bf16.msra.mxu0 %v3728_v31  ;;  %v3778_v31 = vld [vmem:[%s4911_s16 + $0xe8] ss:$16 sps:$4 sm:$0xff]  }
 0x792   : > { %3450 = vmatprep.subr.bf16.mxu0 %v4354_v29 }
 0x795   : > { %3451 = vmatpush3.bf16.msra.mxu0 %v3729_v32 }
 0x796   : > { %3452 = vmatprep.subr.bf16.mxu0 %v4354_v29 }
 0x799   : > { %3453 = vmatpush3.bf16.msra.mxu0 %v3730_v33 }
 0x79a   : > { %3454 = vmatprep.subr.bf16.mxu0 %v4354_v29 }
 0x79d   : > { %3455 = vmatpush3.bf16.msra.mxu0 %v3731_v34 }
 0x79e   : > { %3456 = vmatprep.subr.bf16.mxu0 %v4354_v29  ;;  %v3204_v29 = vld [vmem:[%s1042_s0] ss:$0 sm:$0xff]  ;;  %s5556_s0 = sld [smem:[#allocation49_spill]] }
 0x7a1   : > { %3457 = vmatpush3.bf16.msra.mxu0 %v3732_v35 }
 0x7a2   : > { %2048 = vmatprep.subr.bf16.mxu0 %v3738_v55 }
 0x7a4   : > { %v3787_v55 = vld [vmem:[%s5556_s0 + $0x8] sm:$0xff]  }
 0x7fb   : > { %v1570_v19 = vpop.xlane.xlu0 %1569 }
 0x7fc   : > { %3825 = vrcp.f32 %v1570_v19  ;;  %v3765_v19 = vld [vmem:[%s4911_s16 + $0xa4] ss:$16 sps:$4 sm:$0xff]  }
 0x7fd   : > { %v1573_v20 = vpop.xlane.xlu1 %1572 }
 0x7fe   : > { %3827 = vrcp.f32 %v1573_v20  ;;  %v3768_v20 = vld [vmem:[%s4911_s16 + $0xac] ss:$16 sps:$4 sm:$0xff]  }
 0x7ff   : > { %v1581_v21 = vpop.permute.xlu0 %1580 }
 0x800   : > { %3437 = vmatpush3.bf16.msra.mxu1 %v1581_v21  ;;  %v3763_v21 = vld [vmem:[%s4911_s16 + $0xa0] ss:$16 sps:$4 sm:$0xff]  }
 0x801   : > { %2005 = vmatprep.subr.bf16.mxu1 %v3735_v53  ;;  %v3785_v53 = vld [vmem:[%s5556_s0 + $0x48] sm:$0xff]  }
 0x806   : > { %v3826_v22 = vpop.eup %3825 }
 0x807   : > { %v1576_v24 = vmul.f32 %v3826_v22, %v3822_v14  ;;  %v3759_v14 = vld [vmem:[%s4911_s16 + $0x84] ss:$16 sps:$4 sm:$0xff]   ;;  %v3766_v22 = vld [vmem:[%s4911_s16 + $0xa8] ss:$16 sps:$4 sm:$0xff]  }
 0x808   : > { %v3828_v23 = vpop.eup %3827 }
 0x809   : > { %v1577_v25 = vmul.f32 %v3828_v23, %v3824_v16  ;;  %v3757_v16 = vld [vmem:[%s4911_s16 + $0x80] ss:$16 sps:$4 sm:$0xff]   ;;  %v3771_v23 = vld [vmem:[%s4911_s16 + $0xc4] ss:$16 sps:$4 sm:$0xff]  }
 0x80b   : > { %v1578_v26 = vpack.c.bf16 %v1577_v25, %v1576_v24  ;;  %v3774_v24 = vld [vmem:[%s4911_s16 + $0xcc] ss:$16 sps:$4 sm:$0xff]   ;;  %v3769_v25 = vld [vmem:[%s4911_s16 + $0xc0] ss:$16 sps:$4 sm:$0xff]  }
 0x80d   : > { %3439 = vmatmul.mubr.msk.bf16.vlgmr.msra.gmra.mrb[16].mxu1 %vm1429_vm2, %v1578_v26  ;;  %v3772_v26 = vld [vmem:[%s4911_s16 + $0xc8] ss:$16 sps:$4 sm:$0xff]  }
 0x80e   : > { %2037 = vmatprep.mubr.bf16.mxu1 %v4353_v28  ;;  %2006 = vmatpush1.bf16.msra.mxu1 %v3733_v52  ;;  %v3784_v52 = vld [vmem:[%s5556_s0 + $0x80] sm:$0xff]  }
 0x80f   : > { %2007 = vmatprep.subr.bf16.mxu1 %v3741_v58  ;;  %v3788_v58 = vld [vmem:[%s5556_s0 + $0x88] sm:$0xff]  }
 0x812   : > { %2008 = vmatpush1.bf16.msra.mxu1 %v3739_v61  ;;  %v3790_v61 = vld [vmem:[%s5556_s0 + $0xd0] sm:$0xff]  }
 0x813   : > { %2009 = vmatprep.subr.bf16.mxu1 %v3747_v5  ;;  %v3800_v5 = vld [vmem:[%s5556_s0 + $0xa0] sm:$0xff]  }
 0x816   : > { %2010 = vmatpush1.bf16.msra.mxu1 %v3745_v7  ;;  %v3802_v7 = vld [vmem:[%s5556_s0 + $0xe8] sm:$0xff]  }
 0x817   : > { %2011 = vmatprep.subr.bf16.mxu1 %v3753_v10  ;;  %v3804_v10 = vld [vmem:[%s5556_s0 + $0xa8] sm:$0xff]  }
 0x81a   : > { %2012 = vmatpush1.bf16.msra.mxu1 %v3751_v12  ;;  %v3806_v12 = vld [vmem:[%s5556_s0 + $0xf0] sm:$0xff]  }
 0x81b   : > { %2013 = vmatprep.subr.bf16.mxu1 %v3759_v14  ;;  %v3808_v14 = vld [vmem:[%s5556_s0 + $0xb0] sm:$0xff]  }
 0x81e   : > { %2014 = vmatpush1.bf16.msra.mxu1 %v3757_v16  ;;  %v3810_v16 = vld [vmem:[%s5556_s0 + $0xf8] sm:$0xff]  }
 0x81f   : > { %2015 = vmatprep.subr.bf16.mxu1 %v3765_v19  ;;  %v3812_v19 = vld [vmem:[%s5556_s0 + $0xb8] sm:$0xff]  }
 0x822   : > { %2016 = vmatpush1.bf16.msra.mxu1 %v3763_v21  ;;  %v1839_v21 = vsub.s32 3, %v5041_v56 }
 0x823   : > { %2017 = vmatprep.subr.bf16.mxu1 %v3771_v23 }
 0x826   : > { %2018 = vmatpush1.bf16.msra.mxu1 %v3769_v25 }
 0x827   : > { %2019 = vmatprep.subr.bf16.mxu1 %v3777_v17 }
 0x82a   : > { %2020 = vmatpush1.bf16.msra.mxu1 %v3775_v30 }
 0x8e0   : > { %v1620_v36 = vpop.f32.mrb[16].mxu1 }
 0x8e1   : > { %v3440_v37 = vpop.f32.mrb[17].mxu1 }
 0x8e2   : > { %v1623_v38 = vpop.f32.mrb[18].mxu1 }
 0x8e3   : > { %v1627_v39 = vpack.c.bf16 %v1623_v38, %v1620_v36  ;;  %v3441_v40 = vpop.f32.mrb[19].mxu1 }
 0x8e5   : > { %1629 = vrot.lane.b32.xlu1 %v1627_v39, %s4356_s25  ;;  %v3213_v39 = vld [vmem:[%s1045_s26] ss:$0 sm:$0xff] }
 0x957   : > { %v1630_v41 = vpop.permute.xlu1 %1629 }
 0x958   : > { %1633 = vst.msk [vmem:[#allocation2] sm:$0xff] %vm1632_vm3, %v1630_v41 }
 0x95f   : > { %v1634_v42 = vld [vmem:[#allocation2] sm:$0xff] }
 0x960   : > { %3459 = vmatmul.mubr.bf16.vlgmr.msra.gmra.mrb[4].mxu0 %v1634_v42 }
 0x961   : > { %2080 = vmatprep.mubr.bf16.mxu0 %v4353_v28  ;;  %2049 = vmatpush1.bf16.msra.mxu0 %v3736_v54  ;;  %v3786_v54 = vld [vmem:[%s5556_s0 + $0xc8] sm:$0xff]  }
 0x962   : > { %2050 = vmatprep.subr.bf16.mxu0 %v3744_v60  ;;  %v3789_v60 = vld [vmem:[%s5556_s0 + $0x50] sm:$0xff]  }
 0xa33   : > { %v1740_v43 = vpop.f32.mrb[4].mxu0 }
 0xa34   : > { %v1741_v44 = vadd.f32 %v3204_v29, %v1740_v43  ;;  %v3460_v45 = vpop.f32.mrb[5].mxu0  ;;  %v3214_v43 = vld [vmem:[%s5558_s20] ss:$0 sm:$0xff] }
 0xa35   : > { %v1743_v46 = vpop.f32.mrb[6].mxu0 }
 0xa36   : > { %v1744_v47 = vadd.f32 %v3204_v29, %v1743_v46  ;;  %v3461_v48 = vpop.f32.mrb[7].mxu0  ;;  %v1747_v51 = vadd.f32 %v1741_v44, %v5019_v49  ;;  %v3742_v49 = vld [vmem:[%s4911_s16 + $0x28] ss:$16 sps:$4 sm:$0xff]  }
 0xa37   : > { %2051 = vmatpush1.bf16.msra.mxu0 %v3742_v49  ;;  %v3781_v48 = vld [vmem:[%s5556_s0 + $0x40] sm:$0xff]   ;;  %v3791_v49 = vld [vmem:[%s5556_s0 + $0x10] sm:$0xff]  }
 0xa38   : > { %1751 = vadd.xlane.f32.xlu1 %v1747_v51  ;;  %v1748_v28 = vadd.f32 %v1744_v47, %v5022_v50  ;;  %2052 = vmatprep.subr.bf16.mxu0 %v3750_v6  ;;  %v3801_v6 = vld [vmem:[%s5556_s0 + $0x68] sm:$0xff]  }
 0xa39   : > { %3336 = vmatprep.subr.bf16.mxu1 %v3781_v48 }
 0xa3a   : > { %1753 = vadd.xlane.f32.xlu0 %v1748_v28 }
 0xa3b   : > { %2053 = vmatpush1.bf16.msra.mxu0 %v3748_v8  ;;  %v3803_v8 = vld [vmem:[%s5556_s0 + $0x28] sm:$0xff]  }
 0xa3c   : > { %2054 = vmatprep.subr.bf16.mxu0 %v3756_v11  ;;  %v3805_v11 = vld [vmem:[%s5556_s0 + $0x70] sm:$0xff]  }
 0xa3f   : > { %2055 = vmatpush1.bf16.msra.mxu0 %v3754_v13  ;;  %v3807_v13 = vld [vmem:[%s5556_s0 + $0x30] sm:$0xff]  }
 0xa40   : > { %2056 = vmatprep.subr.bf16.mxu0 %v3762_v15  ;;  %v3809_v15 = vld [vmem:[%s5556_s0 + $0x78] sm:$0xff]  }
 0xa43   : > { %2057 = vmatpush1.bf16.msra.mxu0 %v3760_v18  ;;  %v3811_v18 = vld [vmem:[%s5556_s0 + $0x38] sm:$0xff]  }
 0xa44   : > { %2058 = vmatprep.subr.bf16.mxu0 %v3768_v20  ;;  %v1823_v20 = vld [vmem:[%s4977_s2] sm:$0xf] }
 0xa45   : > { %v1836_v23 = vrot.slane %v1823_v20, %v1150_v9  ;;  %v1840_v25 = vrot.slane %v1823_v20, %v1839_v21 }
 0xa47   : > { %2059 = vmatpush1.bf16.msra.mxu0 %v3766_v22  ;;  %v1828_v22 = vrot.slane %v1823_v20, %v1142_v57 }
 0xa48   : > { %2060 = vmatprep.subr.bf16.mxu0 %v3774_v24  ;;  %v1832_v24 = vrot.slane %v1823_v20, %v1146_v59 }
 0xa4b   : > { %2061 = vmatpush1.bf16.msra.mxu0 %v3772_v26 }
 0xa4c   : > { %2062 = vmatprep.subr.bf16.mxu0 %v3780_v27 }
 0xa4f   : > { %2063 = vmatpush1.bf16.msra.mxu0 %v3778_v31 }
 0xac5   : > { %v1752_v50 = vpop.xlane.xlu1 %1751 }
 0xac6   : > { %v1756_v62 = vmul.f32 0.0078125, %v1752_v50  ;;  %v3792_v50 = vld [vmem:[%s5556_s0 + $0x90] sm:$0xff]  }
 0xac7   : > { %v1754_v63 = vpop.xlane.xlu0 %1753 }
 0xac8   : > { %v5122_v0 = vsub.f32 %v1747_v51, %v1756_v62  ;;  %v1757_v1 = vmul.f32 0.0078125, %v1754_v63  ;;  %v3782_v51 = vld [vmem:[%s5556_s0 + $0xc0] sm:$0xff]   ;;  %v3793_v62 = vld [vmem:[%s5556_s0 + $0x58] sm:$0xff]  }
 0xac9   : > { %3358 = vmatprep.subr.bf16.mxu0 %v3782_v51  ;;  %v3794_v63 = vld [vmem:[%s5556_s0 + $0xd8] sm:$0xff]  }
 0xaca   : > { %v5124_v2 = vsub.f32 %v1748_v28, %v1757_v1  ;;  %v1760_v3 = vmul.f32 %v5122_v0, %v5122_v0  ;;  %v3783_v28 = vld [vmem:[%s5556_s0] sm:$0xff]   ;;  %v3796_v1 = vld [vmem:[%s5556_s0 + $0x98] sm:$0xff]  }
 0xacc   : > { %1762 = vadd.xlane.f32.xlu0 %v1760_v3  ;;  %v1761_v4 = vmul.f32 %v5124_v2, %v5124_v2  ;;  %v3798_v3 = vld [vmem:[%s5556_s0 + $0xe0] sm:$0xff]  }
 0xace   : > { %1764 = vadd.xlane.f32.xlu1 %v1761_v4  ;;  %v3799_v4 = vld [vmem:[%s5556_s0 + $0x20] sm:$0xff]  }
 0xb59   : > { %v1763_v32 = vpop.xlane.xlu0 %1762 }
 0xb5a   : > { %v1766_v33 = vmul.f32 0.0078125, %v1763_v32 }
 0xb5b   : > { %v1765_v34 = vpop.xlane.xlu1 %1764 }
 0xb5c   : > { %v1768_v35 = vadd.f32 1e-12, %v1766_v33  ;;  %v1767_v36 = vmul.f32 0.0078125, %v1765_v34 }
 0xb5e   : > { %3829 = vrsqrt.f32 %v1768_v35  ;;  %v1769_v37 = vadd.f32 1e-12, %v1767_v36 }
 0xb60   : > { %3831 = vrsqrt.f32 %v1769_v37 }
 0xb68   : > { %v3830_v38 = vpop.eup %3829 }
 0xb69   : > { %v1772_v40 = vmul.f32 %v3830_v38, %v5122_v0  ;;  %v3795_v0 = vld [vmem:[%s5556_s0 + $0x18] sm:$0xff]  }
 0xb6a   : > { %v3832_v41 = vpop.eup %3831 }
 0xb6b   : > { %v1773_v42 = vmul.f32 %v3832_v41, %v5124_v2  ;;  %v1780_v29 = vmul.f32 %v3213_v39, %v1772_v40  ;;  %v3797_v2 = vld [vmem:[%s5556_s0 + $0x60] sm:$0xff]  }
 0xb6d   : > { %v1781_v44 = vmul.f32 %v3213_v39, %v1773_v42  ;;  %v5163_v45 = vadd.f32 %v3214_v43, %v1780_v29 }
 0xb6f   : > { %v5165_v46 = vadd.f32 %v3214_v43, %v1781_v44 }
 0xb71   : > { %v1790_v47 = vpack.c.bf16 %v5165_v46, %v5163_v45 }
 0xb73   : > { %2038 = vmatmul.mubr.bf16.vlgmr.msra.gmra.mrb[20].mxu1 %v1790_v47  ;;  %2081 = vmatmul.mubr.bf16.vlgmr.msra.gmra.mrb[8].mxu0 %v1790_v47 }
 0xb74   : > { %3337 = vmatpush3.bf16.msra.mxu1 %v3783_v28  ;;  %3359 = vmatpush3.bf16.msra.mxu0 %v3784_v52 }
 0xb75   : > { %3338 = vmatprep.subr.bf16.mxu1 %v3785_v53  ;;  %3360 = vmatprep.subr.bf16.mxu0 %v3786_v54 }
 0xb78   : > { %3339 = vmatpush3.bf16.msra.mxu1 %v3787_v55  ;;  %3361 = vmatpush3.bf16.msra.mxu0 %v3788_v58 }
 0xb79   : > { %3340 = vmatprep.subr.bf16.mxu1 %v3789_v60  ;;  %3362 = vmatprep.subr.bf16.mxu0 %v3790_v61 }
 0xb7c   : > { %3341 = vmatpush3.bf16.msra.mxu1 %v3791_v49  ;;  %3363 = vmatpush3.bf16.msra.mxu0 %v3792_v50 }
 0xb7d   : > { %3342 = vmatprep.subr.bf16.mxu1 %v3793_v62  ;;  %3364 = vmatprep.subr.bf16.mxu0 %v3794_v63 }
 0xb80   : > { %3343 = vmatpush3.bf16.msra.mxu1 %v3795_v0  ;;  %3365 = vmatpush3.bf16.msra.mxu0 %v3796_v1 }
 0xb81   : > { %3344 = vmatprep.subr.bf16.mxu1 %v3797_v2  ;;  %3366 = vmatprep.subr.bf16.mxu0 %v3798_v3 }
 0xb84   : > { %3345 = vmatpush3.bf16.msra.mxu1 %v3799_v4  ;;  %3367 = vmatpush3.bf16.msra.mxu0 %v3800_v5 }
 0xb85   : > { %3346 = vmatprep.subr.bf16.mxu1 %v3801_v6  ;;  %3368 = vmatprep.subr.bf16.mxu0 %v3802_v7 }
 0xb88   : > { %3347 = vmatpush3.bf16.msra.mxu1 %v3803_v8  ;;  %3369 = vmatpush3.bf16.msra.mxu0 %v3804_v10 }
 0xb89   : > { %3348 = vmatprep.subr.bf16.mxu1 %v3805_v11  ;;  %3370 = vmatprep.subr.bf16.mxu0 %v3806_v12 }
 0xb8c   : > { %3349 = vmatpush3.bf16.msra.mxu1 %v3807_v13  ;;  %3371 = vmatpush3.bf16.msra.mxu0 %v3808_v14 }
 0xb8d   : > { %3350 = vmatprep.subr.bf16.mxu1 %v3809_v15  ;;  %3372 = vmatprep.subr.bf16.mxu0 %v3810_v16 }
 0xb90   : > { %3351 = vmatpush3.bf16.msra.mxu1 %v3811_v18  ;;  %3373 = vmatpush3.bf16.msra.mxu0 %v3812_v19 }
 0xc46   : > { %v2039_v26 = vpop.f32.mrb[20].mxu1  ;;  %v2082_v17 = vpop.f32.mrb[8].mxu0 }
 0xc47   : > { %v5209_v27 = vadd.f32 %v2039_v26, %v1828_v22  ;;  %v5211_v30 = vadd.f32 %v2082_v17, %v1836_v23  ;;  %v2041_v31 = vpop.f32.mrb[21].mxu1  ;;  %v2084_v32 = vpop.f32.mrb[9].mxu0 }
 0xc48   : > { %v5213_v33 = vadd.f32 %v2041_v31, %v1832_v24  ;;  %v5215_v34 = vadd.f32 %v2084_v32, %v1840_v25  ;;  %v2043_v57 = vpop.f32.mrb[22].mxu1  ;;  %v2086_v35 = vpop.f32.mrb[10].mxu0 }
 0xc49   : > { %v2099_v9 = vmul.f32 0.044715, %v5209_v27  ;;  %v2101_v56 = vmul.f32 0.044715, %v5211_v30  ;;  %v2044_v59 = vadd.f32 %v2043_v57, %v1828_v22  ;;  %v2087_v36 = vadd.f32 %v2086_v35, %v1836_v23  ;;  %v2045_v37 = vpop.f32.mrb[23].mxu1  ;;  %v2088_v38 = vpop.f32.mrb[11].mxu0 }
 0xc4a   : > { %v2100_v39 = vmul.f32 0.044715, %v5213_v33  ;;  %v2102_v40 = vmul.f32 0.044715, %v5215_v34  ;;  %v5221_v41 = vadd.f32 %v2045_v37, %v1832_v24  ;;  %v5223_v42 = vadd.f32 %v2088_v38, %v1840_v25 }
 0xc4b   : > { %v2107_v29 = vmul.f32 %v2099_v9, %v5209_v27  ;;  %v2109_v43 = vmul.f32 %v2101_v56, %v5211_v30  ;;  %v2103_v44 = vmul.f32 0.044715, %v2044_v59  ;;  %v2105_v47 = vmul.f32 0.044715, %v2087_v36 }
 0xc4c   : > { %v2108_v48 = vmul.f32 %v2100_v39, %v5213_v33  ;;  %v2110_v51 = vmul.f32 %v2102_v40, %v5215_v34  ;;  %v2104_v28 = vmul.f32 0.044715, %v5221_v41  ;;  %v2106_v52 = vmul.f32 0.044715, %v5223_v42 }
 0xc4d   : > { %v2115_v53 = vmul.f32 %v2107_v29, %v5209_v27  ;;  %v2117_v54 = vmul.f32 %v2109_v43, %v5211_v30  ;;  %v2111_v55 = vmul.f32 %v2103_v44, %v2044_v59  ;;  %v2113_v58 = vmul.f32 %v2105_v47, %v2087_v36 }
 0xc4e   : > { %v2116_v60 = vmul.f32 %v2108_v48, %v5213_v33  ;;  %v2118_v61 = vmul.f32 %v2110_v51, %v5215_v34  ;;  %v2112_v49 = vmul.f32 %v2104_v28, %v5221_v41  ;;  %v2114_v50 = vmul.f32 %v2106_v52, %v5223_v42 }
 0xc4f   : > { %v2123_v62 = vadd.f32 %v2115_v53, %v5209_v27  ;;  %v2125_v63 = vadd.f32 %v2117_v54, %v5211_v30  ;;  %v2119_v0 = vmul.f32 %v2111_v55, %v2044_v59  ;;  %v2121_v1 = vmul.f32 %v2113_v58, %v2087_v36 }
 0xc50   : > { %v2120_v2 = vmul.f32 %v2112_v49, %v5221_v41  ;;  %v2122_v3 = vmul.f32 %v2114_v50, %v5223_v42  ;;  %v2124_v8 = vadd.f32 %v2116_v60, %v5213_v33  ;;  %v2126_v13 = vadd.f32 %v2118_v61, %v5215_v34 }
 0xc51   : > { %v2131_v4 = vmul.f32 0.7978846, %v2123_v62  ;;  %v2133_v5 = vmul.f32 0.7978846, %v2125_v63  ;;  %v2127_v6 = vadd.f32 %v2119_v0, %v2044_v59  ;;  %v2129_v7 = vadd.f32 %v2121_v1, %v2087_v36 }
 0xc52   : > { %v2128_v10 = vadd.f32 %v2120_v2, %v5221_v41  ;;  %v2132_v14 = vmul.f32 0.7978846, %v2124_v8  ;;  %v2130_v16 = vadd.f32 %v2122_v3, %v5223_v42  ;;  %v2134_v18 = vmul.f32 0.7978846, %v2126_v13 }
 0xc53   : > { %3833 = vtanh.f32 %v2131_v4  ;;  %v2135_v11 = vmul.f32 0.7978846, %v2127_v6  ;;  %v2137_v12 = vmul.f32 0.7978846, %v2129_v7  ;;  %v2091_v26 = vmul.f32 0.5, %v5209_v27 }
 0xc54   : > { %3835 = vtanh.f32 %v2133_v5  ;;  %v2136_v15 = vmul.f32 0.7978846, %v2128_v10  ;;  %v2138_v19 = vmul.f32 0.7978846, %v2130_v16  ;;  %v2095_v17 = vmul.f32 0.5, %v2044_v59 }
 0xc55   : > { %3837 = vtanh.f32 %v2135_v11  ;;  %v2093_v57 = vmul.f32 0.5, %v5211_v30  ;;  %v2097_v35 = vmul.f32 0.5, %v2087_v36  ;;  %v2092_v37 = vmul.f32 0.5, %v5213_v33 }
 0xc56   : > { %3839 = vtanh.f32 %v2137_v12  ;;  %v2096_v43 = vmul.f32 0.5, %v5221_v41  ;;  %v2094_v59 = vmul.f32 0.5, %v5215_v34  ;;  %v2098_v51 = vmul.f32 0.5, %v5223_v42  ;;  %v3247_v34 = vld [vmem:[%s1052_s9] ss:$0 sm:$0xff] }
 0xc57   : > { %3841 = vtanh.f32 %v2132_v14 }
 0xc58   : > { %3843 = vtanh.f32 %v2136_v15 }
 0xc59   : > { %3845 = vtanh.f32 %v2134_v18 }
 0xc5a   : > { %3847 = vtanh.f32 %v2138_v19 }
 0xc5d   : > { %v3834_v20 = vpop.eup %3833 }
 0xc5e   : > { %v3836_v21 = vpop.eup %3835  ;;  %v2147_v22 = vadd.f32 1.0, %v3834_v20 }
 0xc5f   : > { %v3838_v23 = vpop.eup %3837  ;;  %v2149_v24 = vadd.f32 1.0, %v3836_v21 }
 0xc60   : > { %v3840_v25 = vpop.eup %3839  ;;  %v2151_v31 = vadd.f32 1.0, %v3838_v23  ;;  %v2155_v39 = vmul.f32 %v2147_v22, %v2091_v26  ;;  %v3280_v26 = vld [vmem:[%s5560_s27] ss:$0 sm:$0xff] }
 0xc61   : > { %v3842_v32 = vpop.eup %3841  ;;  %v2153_v9 = vadd.f32 1.0, %v3840_v25  ;;  %v2157_v47 = vmul.f32 %v2149_v24, %v2093_v57 }
 0xc62   : > { %v3844_v56 = vpop.eup %3843  ;;  %v2148_v38 = vadd.f32 1.0, %v3842_v32  ;;  %v2159_v40 = vmul.f32 %v2151_v31, %v2095_v17  ;;  %v3281_v32 = vld [vmem:[%s5561_s3] ss:$0 sm:$0xff] }
 0xc63   : > { %v3846_v29 = vpop.eup %3845  ;;  %v2152_v44 = vadd.f32 1.0, %v3844_v56  ;;  %v2161_v48 = vmul.f32 %v2153_v9, %v2097_v35 }
 0xc64   : > { %v3848_v27 = vpop.eup %3847  ;;  %v2150_v30 = vadd.f32 1.0, %v3846_v29  ;;  %v2163_v36 = vpack.c.bf16 %v2159_v40, %v2155_v39  ;;  %v2156_v28 = vmul.f32 %v2148_v38, %v2092_v37  ;;  %v3853_v38 = vld [vmem:[%s5563_s22] sm:$0xff] (!%p3282_p6)   ;;  %v4357_v39 = vmov (!%p3282_p6), 0.0   ;;  %v3854_v40 = vld [vmem:[%s5563_s22 + $0x8] sm:$0xff] (!%p3282_p6)   ;;  %v3855_v29 = vld [vmem:[%s5563_s22 + $0x10] sm:$0xff] (!%p3282_p6)  }
 0xc65   : > { %v2160_v52 = vmul.f32 %v2152_v44, %v2096_v43  ;;  %v2154_v33 = vadd.f32 1.0, %v3848_v27  ;;  %v2165_v53 = vpack.c.bf16 %v2161_v48, %v2157_v47  ;;  %3462 = vmatprep.subr.bf16.mxu0 (!%p3282_p6), %v4357_v39  ;;  %3482 = vmatprep.subr.bf16.mxu1 (!%p3282_p6), %v4357_v39  ;;  %v3861_v43 = vld [vmem:[#allocation17] sm:$0xff] (!%p3282_p6)   ;;  %v3862_v47 = vld [vmem:[#allocation17 + $0x8] sm:$0xff] (!%p3282_p6)   ;;  %v3863_v27 = vld [vmem:[#allocation17 + $0x10] sm:$0xff] (!%p3282_p6)  }
 0xc66   : > { %v2158_v55 = vmul.f32 %v2150_v30, %v2094_v59  ;;  %v3856_v44 = vld [vmem:[%s5563_s22 + $0x18] sm:$0xff] (!%p3282_p6)   ;;  %v3857_v48 = vld [vmem:[%s5563_s22 + $0x20] sm:$0xff] (!%p3282_p6)   ;;  %v3858_v59 = vld [vmem:[%s5563_s22 + $0x28] sm:$0xff] (!%p3282_p6)  }
 0xc67   : > { %v2164_v54 = vpack.c.bf16 %v2160_v52, %v2156_v28  ;;  %v2162_v58 = vmul.f32 %v2154_v33, %v2098_v51  ;;  %v3864_v51 = vld [vmem:[#allocation17 + $0x18] sm:$0xff] (!%p3282_p6)   ;;  %v3865_v52 = vld [vmem:[#allocation17 + $0x20] sm:$0xff] (!%p3282_p6)   ;;  %v3866_v33 = vld [vmem:[#allocation17 + $0x28] sm:$0xff] (!%p3282_p6)  }
 0xc68   : > { %v3859_v30 = vld [vmem:[%s5563_s22 + $0x30] sm:$0xff] (!%p3282_p6)  }
 0xc69   : > { %2462 = vmatprep.mubr.bf16.mxu1 %v2164_v54  ;;  %v2166_v41 = vpack.c.bf16 %v2162_v58, %v2158_v55  ;;  %v3868_v54 = vld [vmem:[#allocation17 + $0x38] sm:$0xff] (!%p3282_p6)  }
 0xc6a   : > { %2463 = vmatmul.mubr.bf16.vlgmr.msra.gmra.mrb[24].mxu1 %v2163_v36  ;;  %v3860_v36 = vld [vmem:[%s5563_s22 + $0x38] sm:$0xff] (!%p3282_p6)   ;;  %v2577_v55 = vld [vmem:[#allocation15] sm:$0x1] (!%p3282_p6) }
 0xc6b   : > { %2503 = vmatprep.mubr.bf16.mxu0 %v2166_v41  ;;  %3498 = vmatprep.mubr.msk.bf16.mxu1 (!%p3282_p6), %vm4358_vm4, %v4357_v39 }
 0xc6c   : > { %2504 = vmatmul.mubr.bf16.vlgmr.msra.gmra.mrb[12].mxu0 %v2165_v53  ;;  %3483 = vmatpush3.bf16.msra.mxu1 (!%p3282_p6), %v3861_v43  ;;  %v3867_v53 = vld [vmem:[#allocation17 + $0x30] sm:$0xff] (!%p3282_p6)  }
 0xc6d   : > { %3463 = vmatpush3.bf16.msra.mxu0 (!%p3282_p6), %v3853_v38  ;;  %3478 = vmatprep.mubr.msk.bf16.mxu0 (!%p3282_p6), %vm4358_vm4, %v4357_v39 }
 0xc6e   : > { %3464 = vmatprep.subr.bf16.mxu0 (!%p3282_p6), %v4357_v39  ;;  %3484 = vmatprep.subr.bf16.mxu1 (!%p3282_p6), %v4357_v39 }
 0xc70   : > { %3485 = vmatpush3.bf16.msra.mxu1 (!%p3282_p6), %v3862_v47 }
 0xc71   : > { %3465 = vmatpush3.bf16.msra.mxu0 (!%p3282_p6), %v3854_v40  ;;  %3486 = vmatprep.subr.bf16.mxu1 (!%p3282_p6), %v4357_v39 }
 0xc72   : > { %3466 = vmatprep.subr.bf16.mxu0 (!%p3282_p6), %v4357_v39 }
 0xc74   : > { %3487 = vmatpush3.bf16.msra.mxu1 (!%p3282_p6), %v3863_v27 }
 0xc75   : > { %3467 = vmatpush3.bf16.msra.mxu0 (!%p3282_p6), %v3855_v29  ;;  %3488 = vmatprep.subr.bf16.mxu1 (!%p3282_p6), %v4357_v39 }
 0xc76   : > { %3468 = vmatprep.subr.bf16.mxu0 (!%p3282_p6), %v4357_v39 }
 0xc78   : > { %3489 = vmatpush3.bf16.msra.mxu1 (!%p3282_p6), %v3864_v51 }
 0xc79   : > { %3469 = vmatpush3.bf16.msra.mxu0 (!%p3282_p6), %v3856_v44  ;;  %3490 = vmatprep.subr.bf16.mxu1 (!%p3282_p6), %v4357_v39 }
 0xc7a   : > { %3470 = vmatprep.subr.bf16.mxu0 (!%p3282_p6), %v4357_v39 }
 0xc7c   : > { %3491 = vmatpush3.bf16.msra.mxu1 (!%p3282_p6), %v3865_v52 }
 0xc7d   : > { %3471 = vmatpush3.bf16.msra.mxu0 (!%p3282_p6), %v3857_v48  ;;  %3492 = vmatprep.subr.bf16.mxu1 (!%p3282_p6), %v4357_v39 }
 0xc7e   : > { %3472 = vmatprep.subr.bf16.mxu0 (!%p3282_p6), %v4357_v39 }
 0xc80   : > { %3493 = vmatpush3.bf16.msra.mxu1 (!%p3282_p6), %v3866_v33 }
 0xc81   : > { %3473 = vmatpush3.bf16.msra.mxu0 (!%p3282_p6), %v3858_v59  ;;  %3494 = vmatprep.subr.bf16.mxu1 (!%p3282_p6), %v4357_v39 }
 0xc82   : > { %3474 = vmatprep.subr.bf16.mxu0 (!%p3282_p6), %v4357_v39 }
 0xc84   : > { %3495 = vmatpush3.bf16.msra.mxu1 (!%p3282_p6), %v3867_v53 }
 0xc85   : > { %3475 = vmatpush3.bf16.msra.mxu0 (!%p3282_p6), %v3859_v30  ;;  %3496 = vmatprep.subr.bf16.mxu1 (!%p3282_p6), %v4357_v39 }
 0xc86   : > { %3476 = vmatprep.subr.bf16.mxu0 (!%p3282_p6), %v4357_v39 }
 0xc88   : > { %3497 = vmatpush3.bf16.msra.mxu1 (!%p3282_p6), %v3868_v54 }
 0xc89   : > { %3477 = vmatpush3.bf16.msra.mxu0 (!%p3282_p6), %v3860_v36 }
 0xd3d   : > { %v3352_v60 = vpop.f32.mrb[24].mxu1 }
 0xd3e   : > { %v3353_v42 = vpop.f32.mrb[25].mxu1 }
 0xd3f   : > { %v3374_v61 = vpop.f32.mrb[12].mxu0  ;;  %v3354_v49 = vadd.f32 %v3353_v42, %v3352_v60  ;;  %v3355_v50 = vpop.f32.mrb[26].mxu1 }
 0xd40   : > { %v3375_v62 = vpop.f32.mrb[13].mxu0  ;;  %v3356_v63 = vpop.f32.mrb[27].mxu1 }
 0xd41   : > { %v2465_v0 = vadd.f32 %v3354_v49, %v3247_v34  ;;  %v3376_v1 = vadd.f32 %v3375_v62, %v3374_v61  ;;  %v3377_v2 = vpop.f32.mrb[14].mxu0  ;;  %v3357_v3 = vadd.f32 %v3356_v63, %v3355_v50  ;;  %v2684_v50 = vld [vmem:[#allocation18] sm:$0x1] (!%p3282_p6) }
 0xd42   : > { %v3378_v4 = vpop.f32.mrb[15].mxu0 }
 0xd43   : > { %v2506_v5 = vadd.f32 %v3376_v1, %v2465_v0  ;;  %v2468_v6 = vadd.f32 %v3357_v3, %v3247_v34  ;;  %v3379_v7 = vadd.f32 %v3378_v4, %v3377_v2 }
 0xd45   : > { %v2509_v8 = vadd.f32 %v3379_v7, %v2468_v6  ;;  %v2512_v10 = vadd.f32 %v2506_v5, %v5163_v45 }
 0xd47   : > { %2516 = vadd.xlane.f32.xlu0 %v2512_v10  ;;  %v2513_v11 = vadd.f32 %v2509_v8, %v5165_v46 }
 0xd49   : > { %2518 = vadd.xlane.f32.xlu1 %v2513_v11 }
 0xdd4   : > { %v2517_v12 = vpop.xlane.xlu0 %2516 }
 0xdd5   : > { %v2520_v13 = vmul.f32 0.0078125, %v2517_v12 }
 0xdd6   : > { %v2519_v14 = vpop.xlane.xlu1 %2518 }
 0xdd7   : > { %v2522_v15 = vsub.f32 %v2512_v10, %v2520_v13  ;;  %v2521_v16 = vmul.f32 0.0078125, %v2519_v14 }
 0xdd9   : > { %v2523_v18 = vsub.f32 %v2513_v11, %v2521_v16  ;;  %v2524_v19 = vmul.f32 %v2522_v15, %v2522_v15 }
 0xddb   : > { %2526 = vadd.xlane.f32.xlu0 %v2524_v19  ;;  %v2525_v20 = vmul.f32 %v2523_v18, %v2523_v18 }
 0xddd   : > { %2528 = vadd.xlane.f32.xlu1 %v2525_v20 }
 0xe68   : > { %v2527_v21 = vpop.xlane.xlu0 %2526 }
 0xe69   : > { %v2530_v22 = vmul.f32 0.0078125, %v2527_v21 }
 0xe6a   : > { %v2529_v45 = vpop.xlane.xlu1 %2528 }
 0xe6b   : > { %v2532_v23 = vadd.f32 1e-12, %v2530_v22  ;;  %v2531_v46 = vmul.f32 0.0078125, %v2529_v45 }
 0xe6d   : > { %3849 = vrsqrt.f32 %v2532_v23  ;;  %v2533_v24 = vadd.f32 1e-12, %v2531_v46 }
 0xe6f   : > { %3851 = vrsqrt.f32 %v2533_v24 }
 0xe77   : > { %v3850_v25 = vpop.eup %3849 }
 0xe78   : > { %v2536_v17 = vmul.f32 %v3850_v25, %v2522_v15 }
 0xe79   : > { %v3852_v31 = vpop.eup %3851 }
 0xe7a   : > { %v2544_v57 = vmul.f32 %v3280_v26, %v2536_v17  ;;  %v2537_v35 = vmul.f32 %v3852_v31, %v2523_v18  ;;  %2559 = sbr.rel (%p3282_p6) target bundleno = 4154 (0x103a), region = 148 }
 0xe7c   : > { %v2552_v9 = vadd.f32 %v3281_v32, %v2544_v57  ;;  %v2545_v56 = vmul.f32 %v3280_v26, %v2537_v35 }
 0xe7e   : > { %2554 = vst [vmem:[%s4983_s24] sm:$0xff] %v2552_v9  ;;  %v2553_v37 = vadd.f32 %v3281_v32, %v2545_v56  ;;  %v2560_v28 = vpack.c.bf16 (!%p3282_p6), %v2552_v9, %v2552_v9 }
 0xe80   : > { %2555 = vst [vmem:[%s4983_s24 + $0x8] sm:$0xff] %v2553_v37  ;;  %3479 = vmatmul.mubr.bf16.vlgmr.msra.gmra.mrb[0].mxu0 (!%p3282_p6), %v2560_v28 }
 0xf53   : > { %v2660_v58 = vpop.f32.mrb[0].mxu0 }
 0xf54   : > { %v2661_v41 = vadd.f32 %v2660_v58, %v2577_v55  ;;  %v3480_v60 = vpop.f32.mrb[1].mxu0 }
 0xf55   : > { %v2663_v34 = vpop.f32.mrb[2].mxu0 }
 0xf56   : > { %3869 = vtanh.f32 %v2661_v41  ;;  %v3481_v42 = vpop.f32.mrb[3].mxu0 }
 0xf60   : > { %v3870_v61 = vpop.eup %3869 }
 0xf61   : > { %v2667_v49 = vpack.c.bf16 %v3870_v61, %v3870_v61 }
 0xf63   : > { %3499 = vmatmul.mubr.bf16.vlgmr.msra.gmra.mrb[0].mxu1 %v2667_v49 }
0x1036   : > { %v2767_v62 = vpop.f32.mrb[0].mxu1 }
0x1037   : > { %v2768_v63 = vadd.f32 %v2767_v62, %v2684_v50  ;;  %v3500_v0 = vpop.f32.mrb[1].mxu1 }
0x1038   : > { %v2770_v1 = vpop.f32.mrb[2].mxu1 }
0x1039   : > { %2773 = vst [vmem:[%s1022_s11] sm:$0x1] %v2768_v63  ;;  %v3501_v2 = vpop.f32.mrb[3].mxu1 }
0x103a PF: > { %s5564_s0 = sld [smem:[#allocation37_spill]]  ;;  %s5565_s1 = sld [smem:[#allocation43_spill]] }
0x103b   : > { %s5566_s26 = sld [smem:[#allocation70_spill]]  ;;  %s2792_s28 = sshll.u32 %s4983_s24, 4  ;;  %s5298_s28 = int_to_ptr.vmem [resolvable:$true] %s2792_s28 }
0x103c   : > { %s2775_s27 = scalar_lea.sflag [#allocation5], %s4934_s7  ;;  %s4163_s3 = scalar_lea.vmem %s5298_s28, 256 }
0x103d   : > { %p4164_p5 = scmp.ne.s32.totalorder %s5298_s28, %s4163_s3  ;;  %s4359_s2 = smov [#allocation20]  }
0x103e   : > { %s4167_s14 = sshll.u32 %s4359_s2, 4  ;;  %s4168_s14 = int_to_ptr.vmem [resolvable:$false] %s4167_s14 }
0x103f   : > { %s4169_s8 = scalar_lea.vmem %s4168_s14, 512  ;;  %p4170_p4 = scmp.lt.s32.totalorder %s5298_s28, %s4168_s14 }
0x1040   : > { %s3309_s4 = sshll.u32 %s5564_s0, 8  ;;  %p5568_p12 = scmp.ne.s32.totalorder %s5565_s1, 0 }
0x1041   : > { %s5567_s6 = smov %s5566_s26  ;;  %s5295_s29 = scalar_lea.hbm %s5566_s26, %s3309_s4 }
0x1042   : > { %p4165_p11 = pnand %p4164_p5, %p5568_p12  ;;  %p4171_p13 = scmp.lt.s32.totalorder %s4169_s8, %s4163_s3 }
0x1044   : > { %p4166_p1 = pneg %p4165_p11  ;;  %p4172_p3 = por %p4171_p13, %p4170_p4 }
0x1046   : > { %p4173_p10 = pnand %p4172_p3, %p4166_p1 }
0x1048   : > { %4176 = shalt.err (!%p4173_p10)
}
0x1049   : > { %s4177_s24 = scalar_lea.hbm %s5295_s29, 256  ;;  %s4181_s15 = scalar_lea.hbm %s5567_s6, 512 }
0x104a   : > { %p4178_p8 = scmp.ne.s32.totalorder %s5295_s29, %s4177_s24  ;;  %p4182_p0 = scmp.lt.u32.totalorder %s5295_s29, %s5567_s6 }
0x104b   : > { %p4183_p7 = scmp.lt.u32.totalorder %s4181_s15, %s4177_s24  ;;  %p4185_p5 = scmp.lt.u32.totalorder %s4177_s24, %s5295_s29 }
0x104c   : > { %p4179_p2 = pnand %p4178_p8, %p5568_p12 }
0x104d   : > { %p4184_p6 = por %p4183_p7, %p4182_p0 }
0x104e   : > { %p4180_p9 = pneg %p4179_p2 }
0x104f   : > { %p4186_p11 = por %p4185_p5, %p4184_p6 }
0x1051   : > { %p4187_p1 = pnand %p4186_p11, %p4180_p9 }
0x1053   : > { %4190 = shalt.err (!%p4187_p1)
}
0x1054   : > { %s4360_s12 = smov 128   ;;  %s4361_s10 = smov 8  }
0x1055   : > { %3532 = dma.vmem_to_hbm [thread:$0]  (%p5568_p12), %s5298_s28, 256, %s5295_s29, %s2775_s27, %s4360_s12, %s4360_s12, %s4361_s10  }
0x1056   : > { %s3302_s21 = sshll.u32 %s5564_s0, 4  ;;  %s2808_s5 = sshll.u32 %s1022_s11, 4  ;;  %s2809_s5 = int_to_ptr.vmem [resolvable:$true] %s2808_s5 }
0x1057   : > { %s5569_s13 = sld [smem:[#allocation71_spill]]  ;;  %s2780_s4 = scalar_lea.sflag [#allocation22], %s4934_s7 }
0x1058   : > { %s4191_s16 = scalar_lea.vmem %s2809_s5, 16  ;;  %s4362_s20 = smov [#allocation21]  }
0x1059   : > { %p4192_p4 = scmp.ne.s32.totalorder %s2809_s5, %s4191_s16  ;;  %s4195_s26 = sshll.u32 %s4362_s20, 4  ;;  %s4196_s26 = int_to_ptr.vmem [resolvable:$false] %s4195_s26 }
0x105a   : > { %s4197_s3 = scalar_lea.vmem %s4196_s26, 32  ;;  %p4198_p10 = scmp.lt.s32.totalorder %s2809_s5, %s4196_s26 }
0x105b   : > { %p4193_p13 = pnand %p4192_p4, %p5568_p12  ;;  %p4199_p8 = scmp.lt.s32.totalorder %s4197_s3, %s4191_s16 }
0x105d   : > { %s5330_s30 = scalar_lea.hbm %s5569_s13, %s3302_s21  ;;  %p4194_p3 = pneg %p4193_p13 }
0x105e   : > { %p4200_p2 = por %p4199_p8, %p4198_p10 }
0x1060   : > { %p4201_p9 = pnand %p4200_p2, %p4194_p3 }
0x1062   : > { %4204 = shalt.err (!%p4201_p9)
}
0x1063   : > { %s4205_s7 = scalar_lea.hbm %s5330_s30, 16  ;;  %s4209_s29 = scalar_lea.hbm %s5569_s13, 32 }
0x1064   : > { %p4206_p0 = scmp.ne.s32.totalorder %s5330_s30, %s4205_s7  ;;  %p4210_p5 = scmp.lt.u32.totalorder %s5330_s30, %s5569_s13 }
0x1065   : > { %p4211_p11 = scmp.lt.u32.totalorder %s4209_s29, %s4205_s7  ;;  %p4213_p4 = scmp.lt.u32.totalorder %s4205_s7, %s5330_s30 }
0x1066   : > { %p4207_p7 = pnand %p4206_p0, %p5568_p12 }
0x1067   : > { %p4212_p1 = por %p4211_p11, %p4210_p5 }
0x1068   : > { %p4208_p6 = pneg %p4207_p7 }
0x1069   : > { %p4214_p13 = por %p4213_p4, %p4212_p1 }
0x106b   : > { %p4215_p3 = pnand %p4214_p13, %p4208_p6 }
0x106d   : > { %4218 = shalt.err (!%p4215_p3)
}
0x106e   : > { %3533 = dma.vmem_to_hbm [thread:$0]  (%p5568_p12), %s2809_s5, 16, %s5330_s30, %s2780_s4  }
0x106f PF: > { %s5570_s2 = sld [smem:[#allocation40_spill]]  ;;  %s5571_s14 = sld [smem:[#allocation31_spill]] }
0x1070   : > { %s5572_s8 = sld [smem:[#allocation44_spill]] }
0x1075   : > { %p3584_p10 = scmp.ge.s32.totalorder %s5570_s2, 2  ;;  %s2820_s24 = sand.u32 1, %s5571_s14  }
0x1076   : > { %p5573_p8 = scmp.ne.s32.totalorder %s5572_s8, 0  ;;  %s2821_s17 = scalar_lea.sflag [#allocation5], %s2820_s24 }
0x1078   : > { %p3569_p2 = pnand %p3584_p10, %p5573_p8 }
0x107a   : > { %4288 = dma.done.wait (!%p3569_p2), %s2821_s17, 256  }
0x107b   : > { %4290 = vsyncadd (!%p3569_p2), %s2821_s17, 4294967040  ;;  %s2830_s9 = scalar_lea.sflag [#allocation22], %s2820_s24 }
0x107c   : > { %4292 = dma.done.wait (!%p3569_p2), %s2830_s9, 16  }
0x107d   : > { %4294 = vsyncadd (!%p3569_p2), %s2830_s9, 4294967280  ;;  %s50_s5 = sadd.s32 1, %s5570_s2   ;;  %s5574_s2 = sld [smem:[#allocation32_spill]] }
0x107e   : > { %p47_p9 = scmp.ge.s32.totalorder %s50_s5, 6   ;;  %s5575_s25 = sld [smem:[#allocation33_spill]] }
0x107f   : > { %s5576_s26 = sld [smem:[#allocation48_spill]]  ;;  %s5577_s27 = sld [smem:[#allocation34_spill]] }
0x1080   : > { %s5578_s3 = sld [smem:[#allocation35_spill]]  ;;  %s5579_s28 = sld [smem:[#allocation47_spill]] }
0x1081   : > { %s5580_s29 = sld [smem:[#allocation38_spill]]  ;;  %s5581_s0 = sld [smem:[#allocation39_spill]] }
0x1082   : > { %s5582_s4 = sld [smem:[#allocation45_spill]]  ;;  %s5583_s30 = sld [smem:[#allocation46_spill]] }
0x1083   :  { %49 = sbr.rel (!%p47_p9) target bundleno = 41 (0x29), region = 270 }
0x108a   :  { %2834 = vsyncpa [#allocation4], 1 }
0x108b   :  { %2836 = vsyncpa [#allocation4 + $0x1], 1 }
0x108c   :  { %2837 = vsyncpa [#allocation7], 1 }
0x108d   :  { %2839 = vsyncpa [#allocation7 + $0x1], 1 }
0x108e   :  { %2840 = vsyncpa [#allocation10], 1 }
0x108f   :  { %2842 = vsyncpa [#allocation10 + $0x1], 1 }
0x1090   :  { %2843 = vsyncpa [#allocation13], 1 }
0x1091   :  { %2845 = vsyncpa [#allocation13 + $0x1], 1 }
0x1092   :  { %2846 = vsyncpa [#allocation16], 1 }
0x1093   :  { %2847 = vsyncpa [#allocation19], 1 }
0x1094   :  { %2848 = vsyncpa [#allocation5], 1 }
0x1095   :  { %2850 = vsyncpa [#allocation5 + $0x1], 1 }
0x1096   :  { %2851 = vsyncpa [#allocation22], 1 }
0x1097   :  { %2853 = vsyncpa [#allocation22 + $0x1], 1 }

</bundles_post_ra>
